<compile_context>
chip_gen: v6e
topology: v6e:2x2x1
jax: 0.10.0
libtpu: 0.0.40
codegen_flags: <defaults>
</compile_context>

<pallas_src>
import functools

import jax
import jax.numpy as jnp
import numpy as np
from jax.experimental import pallas as pl
from jax.experimental.pallas import tpu as pltpu

LANE = 128
_VMEM_FULL = pl.BlockSpec(memory_space=pltpu.MemorySpace.VMEM)


def _round_up(x, m):
    return ((x + m - 1) // m) * m


def _pad2(x, rows, cols):
    return jnp.pad(x, ((0, rows - x.shape[0]), (0, cols - x.shape[1])))


def _tpu_mem_config():
    """Generation-aware (vmem_limit_bytes, max A_hat tile)."""
    try:
        cap = pltpu.get_tpu_info().vmem_capacity_bytes
    except Exception:
        cap = 64 * 1024 * 1024  # conservative default (v7x-sized)
    if cap <= 64 * 1024 * 1024:               # v7x: 64 MiB VMEM per TensorCore
        return 48 * 1024 * 1024, 2048
    return 96 * 1024 * 1024, 4096             # v5e / v6e: 128 MiB physical


# ---------------------------------------------------------------------------
# Pallas kernels
# ---------------------------------------------------------------------------

def _conv_kernel(x_ref, w_ref, a_ref, b_ref, o_ref, acc_ref, *, tk):
    # h[i] = relu( sum_k A_hat[i,k] @ (X[k] @ W) + b ), emitted bf16.
    # X and W are VMEM-resident; A_hat tiles stream from HBM.
    k = pl.program_id(1)

    @pl.when(k == 0)
    def _():
        acc_ref[...] = jnp.zeros_like(acc_ref)

    off = pl.multiple_of(k * tk, tk)
    xw = jnp.dot(x_ref[pl.ds(off, tk), :], w_ref[...],
                 preferred_element_type=jnp.float32).astype(jnp.bfloat16)
    acc_ref[...] += jnp.dot(a_ref[...], xw, preferred_element_type=jnp.float32)

    @pl.when(k == pl.num_programs(1) - 1)
    def _():
        o_ref[...] = jnp.maximum(acc_ref[...] + b_ref[...], 0.0).astype(o_ref.dtype)


def _conv_pool_kernel(x_ref, w_ref, a_ref, b_ref, p_ref, pooled_ref, acc_ref, *, tk):
    # Last conv layer fused with global_add_pool, producing a PARTIAL pooled
    # block per row tile i (summed later in the MLP head) so the row axis
    # stays "parallel" (v7x megacore).
    k = pl.program_id(1)

    @pl.when(k == 0)
    def _():
        acc_ref[...] = jnp.zeros_like(acc_ref)

    off = pl.multiple_of(k * tk, tk)
    xw = jnp.dot(x_ref[pl.ds(off, tk), :], w_ref[...],
                 preferred_element_type=jnp.float32).astype(jnp.bfloat16)
    acc_ref[...] += jnp.dot(a_ref[...], xw, preferred_element_type=jnp.float32)

    @pl.when(k == pl.num_programs(1) - 1)
    def _():
        h = jnp.maximum(acc_ref[...] + b_ref[...], 0.0)        # f32 epilogue
        pooled_ref[0] = jnp.dot(p_ref[...], h, preferred_element_type=jnp.float32)


def _mlp_head_kernel(p_ref, w1_ref, b1_ref, w2_ref, b2_ref, w3_ref, b3_ref,
                     wh_ref, bh_ref, o_ref):
    # Sum per-row-tile pool partials, then fused MLP tail:
    # 3x (Linear + eval-BN folded into W/b + ReLU), classifier Linear + LogSoftmax.
    # Dropout = identity (eval mode).
    h = jnp.sum(p_ref[...], axis=0)
    h = jnp.maximum(
        jnp.dot(h, w1_ref[...], preferred_element_type=jnp.float32) + b1_ref[...], 0.0)
    h = jnp.maximum(
        jnp.dot(h, w2_ref[...], preferred_element_type=jnp.float32) + b2_ref[...], 0.0)
    h = jnp.maximum(
        jnp.dot(h, w3_ref[...], preferred_element_type=jnp.float32) + b3_ref[...], 0.0)
    y = jnp.dot(h, wh_ref[...], preferred_element_type=jnp.float32) + bh_ref[...]
    m = jnp.max(y, axis=1, keepdims=True)
    lse = jnp.log(jnp.sum(jnp.exp(y - m), axis=1, keepdims=True)) + m
    o_ref[...] = y - lse


# ---------------------------------------------------------------------------
# Kernel wrappers (grids / BlockSpecs / tiling)
# ---------------------------------------------------------------------------

def conv_layer(x_bf16, w, b, a_hat, tm, tk, vmem_limit):
    n_pad = a_hat.shape[0]
    f = LANE
    ni, nk = n_pad // tm, n_pad // tk
    cost = pl.CostEstimate(
        flops=2 * n_pad * n_pad * f + 2 * ni * n_pad * f * f,
        transcendentals=0,
        bytes_accessed=n_pad * n_pad * 2 + n_pad * f * 2 + n_pad * f * 2)
    return pl.pallas_call(
        functools.partial(_conv_kernel, tk=tk),
        out_shape=jax.ShapeDtypeStruct((n_pad, f), jnp.bfloat16),
        grid_spec=pltpu.PrefetchScalarGridSpec(
            num_scalar_prefetch=0,
            grid=(ni, nk),
            in_specs=[
                pl.BlockSpec((n_pad, f), lambda i, k: (0, 0)),   # X  (VMEM resident)
                pl.BlockSpec((f, f), lambda i, k: (0, 0)),       # W  (resident)
                pl.BlockSpec((tm, tk), lambda i, k: (i, k)),     # A_hat tile stream
                pl.BlockSpec((1, f), lambda i, k: (0, 0)),       # bias
            ],
            out_specs=pl.BlockSpec((tm, f), lambda i, k: (i, 0)),
            scratch_shapes=[pltpu.VMEM((tm, f), jnp.float32)]),
        compiler_params=pltpu.CompilerParams(
            dimension_semantics=("parallel", "arbitrary"),
            vmem_limit_bytes=vmem_limit),
        cost_estimate=cost,
    )(x_bf16, w, a_hat, b)


def conv_pool_layer(x_bf16, w, b, a_hat, pool, tm, tk, vmem_limit):
    n_pad = a_hat.shape[0]
    f = LANE
    b_pad = pool.shape[0]
    ni, nk = n_pad // tm, n_pad // tk
    cost = pl.CostEstimate(
        flops=2 * n_pad * n_pad * f + 2 * ni * n_pad * f * f + 2 * b_pad * n_pad * f,
        transcendentals=0,
        bytes_accessed=(n_pad * n_pad * 2 + n_pad * f * 2 + b_pad * n_pad * 4
                        + ni * b_pad * f * 4))
    return pl.pallas_call(
        functools.partial(_conv_pool_kernel, tk=tk),
        out_shape=jax.ShapeDtypeStruct((ni, b_pad, f), jnp.float32),
        grid_spec=pltpu.PrefetchScalarGridSpec(
            num_scalar_prefetch=0,
            grid=(ni, nk),
            in_specs=[
                pl.BlockSpec((n_pad, f), lambda i, k: (0, 0)),   # X  (VMEM resident)
                pl.BlockSpec((f, f), lambda i, k: (0, 0)),       # W  (resident)
                pl.BlockSpec((tm, tk), lambda i, k: (i, k)),     # A_hat tile stream
                pl.BlockSpec((1, f), lambda i, k: (0, 0)),       # bias
                pl.BlockSpec((b_pad, tm), lambda i, k: (0, i)),  # pool columns
            ],
            out_specs=pl.BlockSpec((1, b_pad, f), lambda i, k: (i, 0, 0)),
            scratch_shapes=[pltpu.VMEM((tm, f), jnp.float32)]),
        compiler_params=pltpu.CompilerParams(
            dimension_semantics=("parallel", "arbitrary"),
            vmem_limit_bytes=vmem_limit),
        cost_estimate=cost,
    )(x_bf16, w, a_hat, b, pool)


def mlp_head(partials, w1, b1, w2, b2, w3, b3, wh, bh):
    b_pad = partials.shape[1]
    args = (partials, w1, b1, w2, b2, w3, b3, wh, bh)
    return pl.pallas_call(
        _mlp_head_kernel,
        out_shape=jax.ShapeDtypeStruct((b_pad, LANE), jnp.float32),
        in_specs=[_VMEM_FULL] * len(args),
        out_specs=_VMEM_FULL,
    )(*args)


# ---------------------------------------------------------------------------
# Glue (plain JAX): adjacency normalization, pooling matrix, parameter init
# ---------------------------------------------------------------------------

def build_norm_adj(edge_index, num_nodes):
    # PyG GCNConv flow is source -> target, so aggregation row = dst, col = src.
    src, dst = edge_index[0], edge_index[1]
    a = jnp.zeros((num_nodes, num_nodes), jnp.float32).at[dst, src].add(1.0)
    diag = jnp.diagonal(a)
    a = a + jnp.diag(jnp.where(diag > 0, 0.0, 1.0))   # add self loops only where missing
    deg = jnp.sum(a, axis=1)
    dinv = jnp.where(deg > 0, jax.lax.rsqrt(deg), 0.0)
    return a * dinv[:, None] * dinv[None, :]          # D^-1/2 (A+I) D^-1/2


def build_pool_matrix(batch, num_graphs):
    return (jnp.arange(num_graphs)[:, None] == batch[None, :]).astype(jnp.float32)


def init_params(key, num_features, hidden_channels, hidden, num_layers, num_classes):
    params = {"convs": [], "mlp": [], "head": None}
    dims = [num_features] + [hidden_channels] * num_layers
    for i in range(num_layers):
        key, kw = jax.random.split(key)
        w = jax.random.normal(kw, (dims[i], dims[i + 1]), jnp.float32) * 0.1
        b = jnp.zeros((dims[i + 1],), jnp.float32)
        params["convs"].append((w, b))

    mlp_dims = [(hidden_channels, hidden), (hidden, hidden // 2),
                (hidden // 2, hidden // 2)]
    for (din, dout) in mlp_dims:
        key, kw = jax.random.split(key)
        w = jax.random.normal(kw, (din, dout), jnp.float32) * 0.1
        b = jnp.zeros((dout,), jnp.float32)
        gamma = jnp.ones((dout,), jnp.float32)
        beta = jnp.zeros((dout,), jnp.float32)
        mean = jnp.zeros((dout,), jnp.float32)
        var = jnp.ones((dout,), jnp.float32)
        params["mlp"].append((w, b, gamma, beta, mean, var))

    key, kw = jax.random.split(key)
    w = jax.random.normal(kw, (hidden // 2, num_classes), jnp.float32) * 0.1
    b = jnp.zeros((num_classes,), jnp.float32)
    params["head"] = (w, b)
    return params


# ---------------------------------------------------------------------------
# Forward pass
# ---------------------------------------------------------------------------

@functools.partial(jax.jit, static_argnames=("num_graphs",))
def gcn_forward(params, x, edge_index, batch, num_graphs):
    n = x.shape[0]
    vmem_limit, tile_cap = _tpu_mem_config()
    tm = min(tile_cap, max(256, _round_up(n, 256)))
    tk = tm
    n_pad = _round_up(max(n, tm), tm)
    b_pad = _round_up(max(num_graphs, 1), 8)

    a_hat = _pad2(build_norm_adj(edge_index, n), n_pad, n_pad).astype(jnp.bfloat16)
    pool = _pad2(build_pool_matrix(batch, num_graphs), b_pad, n_pad)
    h = _pad2(x.astype(jnp.float32), n_pad, LANE).astype(jnp.bfloat16)

    convs = params["convs"]
    last = len(convs) - 1
    partials = None
    for l, (w, b) in enumerate(convs):
        w_p = _pad2(w, LANE, LANE).astype(jnp.bfloat16)
        b_p = jnp.pad(b, (0, LANE - b.shape[0])).reshape(1, LANE)
        if l < last:
            h = conv_layer(h, w_p, b_p, a_hat, tm, tk, vmem_limit)
        else:
            partials = conv_pool_layer(h, w_p, b_p, a_hat, pool, tm, tk, vmem_limit)

    # Fold eval-mode BatchNorm1d (and the Linear bias) into the Linear weights.
    fused = []
    for (w, b, gamma, beta, mean, var) in params["mlp"]:
        g = gamma * jax.lax.rsqrt(var + 1e-5)
        w_f = w * g[None, :]
        b_f = b * g + (beta - mean * g)
        fused.append((_pad2(w_f, LANE, LANE),
                      jnp.pad(b_f, (0, LANE - b_f.shape[0])).reshape(1, LANE)))

    w_h, b_h = params["head"]
    num_classes = w_h.shape[1]
    w_hp = _pad2(w_h, LANE, LANE)
    # -1e30 bias on padded class lanes so they vanish from the log-softmax
    # (safe only while the head epilogue stays f32).
    b_hp = jnp.concatenate(
        [b_h, jnp.full((LANE - num_classes,), -1e30, jnp.float32)]).reshape(1, LANE)

    out = mlp_head(partials,
                   fused[0][0], fused[0][1],
                   fused[1][0], fused[1][1],
                   fused[2][0], fused[2][1],
                   w_hp, b_hp)
    return out[:num_graphs, :num_classes]


# Pure-JAX reference (f32) for a correctness spot-check.
def reference_forward(params, x, edge_index, batch, num_graphs):
    n = x.shape[0]
    a = build_norm_adj(edge_index, n)
    h = x
    for (w, b) in params["convs"]:
        h = jnp.maximum(a @ (h @ w) + b, 0.0)
    pool = build_pool_matrix(batch, num_graphs)
    g = pool @ h
    for (w, b, gamma, beta, mean, var) in params["mlp"]:
        y = g @ w + b
        y = gamma * (y - mean) * jax.lax.rsqrt(var + 1e-5) + beta
        g = jnp.maximum(y, 0.0)
    wh, bh = params["head"]
    return jax.nn.log_softmax(g @ wh + bh, axis=1)


# ---------------------------------------------------------------------------

if __name__ == "__main__":
    num_features = 8
    hidden_channels = 16
    hidden = 32
    num_layers = 2
    num_classes = 4
    num_graphs = 2
    nodes_per_graph = 8
    n_nodes = num_graphs * nodes_per_graph

    key = jax.random.PRNGKey(0)
    key, kx = jax.random.split(key)
    x = jax.random.normal(kx, (n_nodes, num_features), jnp.float32)

    # ring graph inside each of the 2 graphs, undirected (both directions)
    src, dst = [], []
    for g in range(num_graphs):
        base = g * nodes_per_graph
        for i in range(nodes_per_graph):
            u = base + i
            v = base + (i + 1) % nodes_per_graph
            src += [u, v]
            dst += [v, u]
    edge_index = jnp.array([src, dst], dtype=jnp.int32)
    batch = jnp.repeat(jnp.arange(num_graphs, dtype=jnp.int32), nodes_per_graph)

    params = init_params(key, num_features, hidden_channels, hidden,
                         num_layers, num_classes)

    out = gcn_forward(params, x, edge_index, batch, num_graphs)
    out = jax.block_until_ready(out)
    assert out.shape == (num_graphs, num_classes)
    # rows of log_softmax should exp-sum to 1
    assert bool(jnp.allclose(jnp.sum(jnp.exp(out), axis=1), 1.0, atol=1e-4))
    # loose check vs f32 reference (A_hat / X / W are bf16 in the kernels)
    ref = reference_forward(params, x, edge_index, batch, num_graphs)
    assert bool(np.allclose(np.asarray(out), np.asarray(ref), atol=5e-2)), \
        "mismatch vs reference"
    print("KERNEL_OK")
</pallas_src>

<mosaic_0001>
module attributes {stable_mosaic.version = 11 : i64} {
  func.func private @main(%arg0: i32) attributes {dimension_semantics = [#tpu.dimension_semantics<core_parallel>], iteration_bounds = array<i64: 2>, tpu.core_type = #tpu.core_type<sc_scalar_subcore>, window_params = []} {
    return
  }
}

module attributes {stable_mosaic.version = 11 : i64} {
  func.func private @main(%arg0: i32) attributes {dimension_semantics = [#tpu.dimension_semantics<core_parallel>], iteration_bounds = array<i64: 2>, tpu.core_type = #tpu.core_type<sc_scalar_subcore>, window_params = []} {
    return
  }
}

module attributes {stable_mosaic.version = 11 : i64} {
  func.func @_mlp_head_kernel(%arg0: memref<1x8x128xf32, #tpu.memory_space<vmem>>, %arg1: memref<128x128xf32, #tpu.memory_space<vmem>>, %arg2: memref<1x128xf32, #tpu.memory_space<vmem>>, %arg3: memref<128x128xf32, #tpu.memory_space<vmem>>, %arg4: memref<1x128xf32, #tpu.memory_space<vmem>>, %arg5: memref<128x128xf32, #tpu.memory_space<vmem>>, %arg6: memref<1x128xf32, #tpu.memory_space<vmem>>, %arg7: memref<128x128xf32, #tpu.memory_space<vmem>>, %arg8: memref<1x128xf32, #tpu.memory_space<vmem>>, %arg9: memref<8x128xf32, #tpu.memory_space<vmem>>) attributes {dimension_semantics = [], scalar_prefetch = 0 : i64, scratch_operands = 0 : i64, tpu.core_type = #tpu.core_type<tc>} {
    %c0 = arith.constant 0 : index
    %c0_0 = arith.constant 0 : index
    %c0_1 = arith.constant 0 : index
    %0 = vector.load %arg0[%c0, %c0_0, %c0_1] : memref<1x8x128xf32, #tpu.memory_space<vmem>>, vector<1x8x128xf32>
    %cst = arith.constant dense<0.000000e+00> : vector<8x128xf32>
    %1 = vector.multi_reduction <add>, %0, %cst [0] : vector<1x8x128xf32> to vector<8x128xf32>
    %c0_2 = arith.constant 0 : index
    %c0_3 = arith.constant 0 : index
    %2 = vector.load %arg1[%c0_2, %c0_3] : memref<128x128xf32, #tpu.memory_space<vmem>>, vector<128x128xf32>
    %cst_4 = arith.constant dense<0.000000e+00> : vector<8x128xf32>
    %3 = tpu.matmul %1, %2, %cst_4 {dimension_numbers = #tpu.dot_dimension_numbers<[1], [0], [0], [1], [0, 0, 1, 1], [], []>} : vector<8x128xf32>, vector<128x128xf32>, vector<8x128xf32> -> vector<8x128xf32>
    %c0_5 = arith.constant 0 : index
    %c0_6 = arith.constant 0 : index
    %4 = vector.load %arg2[%c0_5, %c0_6] : memref<1x128xf32, #tpu.memory_space<vmem>>, vector<1x128xf32>
    %5 = vector.broadcast %4 : vector<1x128xf32> to vector<8x128xf32>
    %6 = arith.addf %3, %5 : vector<8x128xf32>
    %cst_7 = arith.constant 0.000000e+00 : f32
    %7 = vector.broadcast %cst_7 : f32 to vector<8x128xf32>
    %8 = arith.maximumf %6, %7 : vector<8x128xf32>
    %c0_8 = arith.constant 0 : index
    %c0_9 = arith.constant 0 : index
    %9 = vector.load %arg3[%c0_8, %c0_9] : memref<128x128xf32, #tpu.memory_space<vmem>>, vector<128x128xf32>
    %cst_10 = arith.constant dense<0.000000e+00> : vector<8x128xf32>
    %10 = tpu.matmul %8, %9, %cst_10 {dimension_numbers = #tpu.dot_dimension_numbers<[1], [0], [0], [1], [0, 0, 1, 1], [], []>} : vector<8x128xf32>, vector<128x128xf32>, vector<8x128xf32> -> vector<8x128xf32>
    %c0_11 = arith.constant 0 : index
    %c0_12 = arith.constant 0 : index
    %11 = vector.load %arg4[%c0_11, %c0_12] : memref<1x128xf32, #tpu.memory_space<vmem>>, vector<1x128xf32>
    %12 = vector.broadcast %11 : vector<1x128xf32> to vector<8x128xf32>
    %13 = arith.addf %10, %12 : vector<8x128xf32>
    %cst_13 = arith.constant 0.000000e+00 : f32
    %14 = vector.broadcast %cst_13 : f32 to vector<8x128xf32>
    %15 = arith.maximumf %13, %14 : vector<8x128xf32>
    %c0_14 = arith.constant 0 : index
    %c0_15 = arith.constant 0 : index
    %16 = vector.load %arg5[%c0_14, %c0_15] : memref<128x128xf32, #tpu.memory_space<vmem>>, vector<128x128xf32>
    %cst_16 = arith.constant dense<0.000000e+00> : vector<8x128xf32>
    %17 = tpu.matmul %15, %16, %cst_16 {dimension_numbers = #tpu.dot_dimension_numbers<[1], [0], [0], [1], [0, 0, 1, 1], [], []>} : vector<8x128xf32>, vector<128x128xf32>, vector<8x128xf32> -> vector<8x128xf32>
    %c0_17 = arith.constant 0 : index
    %c0_18 = arith.constant 0 : index
    %18 = vector.load %arg6[%c0_17, %c0_18] : memref<1x128xf32, #tpu.memory_space<vmem>>, vector<1x128xf32>
    %19 = vector.broadcast %18 : vector<1x128xf32> to vector<8x128xf32>
    %20 = arith.addf %17, %19 : vector<8x128xf32>
    %cst_19 = arith.constant 0.000000e+00 : f32
    %21 = vector.broadcast %cst_19 : f32 to vector<8x128xf32>
    %22 = arith.maximumf %20, %21 : vector<8x128xf32>
    %c0_20 = arith.constant 0 : index
    %c0_21 = arith.constant 0 : index
    %23 = vector.load %arg7[%c0_20, %c0_21] : memref<128x128xf32, #tpu.memory_space<vmem>>, vector<128x128xf32>
    %cst_22 = arith.constant dense<0.000000e+00> : vector<8x128xf32>
    %24 = tpu.matmul %22, %23, %cst_22 {dimension_numbers = #tpu.dot_dimension_numbers<[1], [0], [0], [1], [0, 0, 1, 1], [], []>} : vector<8x128xf32>, vector<128x128xf32>, vector<8x128xf32> -> vector<8x128xf32>
    %c0_23 = arith.constant 0 : index
    %c0_24 = arith.constant 0 : index
    %25 = vector.load %arg8[%c0_23, %c0_24] : memref<1x128xf32, #tpu.memory_space<vmem>>, vector<1x128xf32>
    %26 = vector.broadcast %25 : vector<1x128xf32> to vector<8x128xf32>
    %27 = arith.addf %24, %26 : vector<8x128xf32>
    %cst_25 = arith.constant dense<0xFF800000> : vector<8xf32>
    %28 = vector.multi_reduction <maximumf>, %27, %cst_25 [1] : vector<8x128xf32> to vector<8xf32>
    %29 = vector.shape_cast %28 : vector<8xf32> to vector<8x1xf32>
    %30 = vector.broadcast %29 : vector<8x1xf32> to vector<8x128xf32>
    %31 = arith.subf %27, %30 : vector<8x128xf32>
    %32 = math.exp %31 : vector<8x128xf32>
    %cst_26 = arith.constant dense<0.000000e+00> : vector<8xf32>
    %33 = vector.multi_reduction <add>, %32, %cst_26 [1] : vector<8x128xf32> to vector<8xf32>
    %34 = vector.shape_cast %33 : vector<8xf32> to vector<8x1xf32>
    %35 = math.log %34 : vector<8x1xf32>
    %36 = arith.addf %35, %29 : vector<8x1xf32>
    %37 = vector.broadcast %36 : vector<8x1xf32> to vector<8x128xf32>
    %38 = arith.subf %27, %37 : vector<8x128xf32>
    %c0_27 = arith.constant 0 : index
    %c0_28 = arith.constant 0 : index
    %39 = vector.load %arg9[%c0_27, %c0_28] : memref<8x128xf32, #tpu.memory_space<vmem>>, vector<8x128xf32>
    tpu.vector_store %arg9[%c0_27, %c0_28], %38 {strides = array<i32>} : memref<8x128xf32, #tpu.memory_space<vmem>>, vector<8x128xf32>,
    return
  }
}

module attributes {stable_mosaic.version = 11 : i64} {
  func.func @_conv_kernel(%arg0: i32, %arg1: i32, %arg2: memref<256x128xbf16, #tpu.memory_space<vmem>>, %arg3: memref<128x128xbf16, #tpu.memory_space<vmem>>, %arg4: memref<256x256xbf16, #tpu.memory_space<vmem>>, %arg5: memref<1x128xf32, #tpu.memory_space<vmem>>, %arg6: memref<256x128xbf16, #tpu.memory_space<vmem>>, %arg7: memref<256x128xf32, #tpu.memory_space<vmem>>) attributes {dimension_semantics = [#tpu.dimension_semantics<parallel>, #tpu.dimension_semantics<arbitrary>], iteration_bounds = array<i64: 1, 1>, scalar_prefetch = 0 : i64, scratch_operands = 1 : i64, tpu.core_type = #tpu.core_type<tc>, window_params = [{pipeline_mode = #tpu.pipeline_mode<synchronous>, transform_indices = @transform_0, window_bounds = array<i64: 256, 128>}, {pipeline_mode = #tpu.pipeline_mode<synchronous>, transform_indices = @transform_1, window_bounds = array<i64: 128, 128>}, {transform_indices = @transform_2, window_bounds = array<i64: 256, 256>}, {pipeline_mode = #tpu.pipeline_mode<synchronous>, transform_indices = @transform_3, window_bounds = array<i64: 1, 128>}, {transform_indices = @transform_4, window_bounds = array<i64: 256, 128>}]} {
    %c0_i32 = arith.constant 0 : i32
    %0 = arith.cmpi eq, %arg1, %c0_i32 : i32
    %1 = arith.extui %0 : i1 to i32
    %c0_i32_0 = arith.constant 0 : i32
    %2 = arith.cmpi ne, %1, %c0_i32_0 : i32
    scf.if %2 {
      %cst_12 = arith.constant 0.000000e+00 : f32
      %18 = vector.broadcast %cst_12 : f32 to vector<256x128xf32>
      %c0_13 = arith.constant 0 : index
      %c0_14 = arith.constant 0 : index
      %19 = vector.load %arg7[%c0_13, %c0_14] : memref<256x128xf32, #tpu.memory_space<vmem>>, vector<256x128xf32>
      tpu.vector_store %arg7[%c0_13, %c0_14], %18 {strides = array<i32>} : memref<256x128xf32, #tpu.memory_space<vmem>>, vector<256x128xf32>,
    } else {
    }
    %c256_i32 = arith.constant 256 : i32
    %3 = arith.muli %arg1, %c256_i32 : i32
    %4 = tpu.assume_multiple %3, 256 : i32
    %5 = arith.index_cast %4 : i32 to index
    %c0 = arith.constant 0 : index
    %6 = vector.load %arg2[%5, %c0] : memref<256x128xbf16, #tpu.memory_space<vmem>>, vector<256x128xbf16>
    %c0_1 = arith.constant 0 : index
    %c0_2 = arith.constant 0 : index
    %7 = vector.load %arg3[%c0_1, %c0_2] : memref<128x128xbf16, #tpu.memory_space<vmem>>, vector<128x128xbf16>
    %cst = arith.constant dense<0.000000e+00> : vector<256x128xf32>
    %8 = tpu.matmul %6, %7, %cst {dimension_numbers = #tpu.dot_dimension_numbers<[1], [0], [0], [1], [0, 0, 1, 1], [], []>} : vector<256x128xbf16>, vector<128x128xbf16>, vector<256x128xf32> -> vector<256x128xf32>
    %9 = arith.truncf %8 : vector<256x128xf32> to vector<256x128xbf16>
    %c0_3 = arith.constant 0 : index
    %c0_4 = arith.constant 0 : index
    %10 = vector.load %arg7[%c0_3, %c0_4] : memref<256x128xf32, #tpu.memory_space<vmem>>, vector<256x128xf32>
    %c0_5 = arith.constant 0 : index
    %c0_6 = arith.constant 0 : index
    %11 = vector.load %arg4[%c0_5, %c0_6] : memref<256x256xbf16, #tpu.memory_space<vmem>>, vector<256x256xbf16>
    %cst_7 = arith.constant dense<0.000000e+00> : vector<256x128xf32>
    %12 = tpu.matmul %11, %9, %cst_7 {dimension_numbers = #tpu.dot_dimension_numbers<[1], [0], [0], [1], [0, 0, 1, 1], [], []>} : vector<256x256xbf16>, vector<256x128xbf16>, vector<256x128xf32> -> vector<256x128xf32>
    %13 = arith.addf %10, %12 : vector<256x128xf32>
    %c0_8 = arith.constant 0 : index
    %c0_9 = arith.constant 0 : index
    %14 = vector.load %arg7[%c0_8, %c0_9] : memref<256x128xf32, #tpu.memory_space<vmem>>, vector<256x128xf32>
    tpu.vector_store %arg7[%c0_8, %c0_9], %13 {strides = array<i32>} : memref<256x128xf32, #tpu.memory_space<vmem>>, vector<256x128xf32>,
    %c0_i32_10 = arith.constant 0 : i32
    %15 = arith.cmpi eq, %arg1, %c0_i32_10 : i32
    %16 = arith.extui %15 : i1 to i32
    %c0_i32_11 = arith.constant 0 : i32
    %17 = arith.cmpi ne, %16, %c0_i32_11 : i32
    scf.if %17 {
      %c0_12 = arith.constant 0 : index
      %c0_13 = arith.constant 0 : index
      %18 = vector.load %arg7[%c0_12, %c0_13] : memref<256x128xf32, #tpu.memory_space<vmem>>, vector<256x128xf32>
      %c0_14 = arith.constant 0 : index
      %c0_15 = arith.constant 0 : index
      %19 = vector.load %arg5[%c0_14, %c0_15] : memref<1x128xf32, #tpu.memory_space<vmem>>, vector<1x128xf32>
      %20 = vector.broadcast %19 : vector<1x128xf32> to vector<256x128xf32>
      %21 = arith.addf %18, %20 : vector<256x128xf32>
      %cst_16 = arith.constant 0.000000e+00 : f32
      %22 = vector.broadcast %cst_16 : f32 to vector<256x128xf32>
      %23 = arith.maximumf %21, %22 : vector<256x128xf32>
      %24 = arith.truncf %23 : vector<256x128xf32> to vector<256x128xbf16>
      %c0_17 = arith.constant 0 : index
      %c0_18 = arith.constant 0 : index
      %25 = vector.load %arg6[%c0_17, %c0_18] : memref<256x128xbf16, #tpu.memory_space<vmem>>, vector<256x128xbf16>
      tpu.vector_store %arg6[%c0_17, %c0_18], %24 {strides = array<i32>} : memref<256x128xbf16, #tpu.memory_space<vmem>>, vector<256x128xbf16>,
    } else {
    }
    return
  }
  func.func @transform_0(%arg0: i32, %arg1: i32) -> (i32, i32) {
    %c0_i32 = arith.constant 0 : i32
    %c0_i32_0 = arith.constant 0 : i32
    %c0_i32_1 = arith.constant 0 : i32
    return %c0_i32, %c0_i32_0 : i32, i32
  }
  func.func @transform_1(%arg0: i32, %arg1: i32) -> (i32, i32) {
    %c0_i32 = arith.constant 0 : i32
    %c0_i32_0 = arith.constant 0 : i32
    %c0_i32_1 = arith.constant 0 : i32
    return %c0_i32, %c0_i32_0 : i32, i32
  }
  func.func @transform_2(%arg0: i32, %arg1: i32) -> (i32, i32) {
    %c0_i32 = arith.constant 0 : i32
    return %arg0, %arg1 : i32, i32
  }
  func.func @transform_3(%arg0: i32, %arg1: i32) -> (i32, i32) {
    %c0_i32 = arith.constant 0 : i32
    %c0_i32_0 = arith.constant 0 : i32
    %c0_i32_1 = arith.constant 0 : i32
    return %c0_i32, %c0_i32_0 : i32, i32
  }
  func.func @transform_4(%arg0: i32, %arg1: i32) -> (i32, i32) {
    %c0_i32 = arith.constant 0 : i32
    %c0_i32_0 = arith.constant 0 : i32
    return %arg0, %c0_i32 : i32, i32
  }
}

module attributes {stable_mosaic.version = 11 : i64} {
  func.func @_conv_pool_kernel(%arg0: i32, %arg1: i32, %arg2: memref<256x128xbf16, #tpu.memory_space<vmem>>, %arg3: memref<128x128xbf16, #tpu.memory_space<vmem>>, %arg4: memref<256x256xbf16, #tpu.memory_space<vmem>>, %arg5: memref<1x128xf32, #tpu.memory_space<vmem>>, %arg6: memref<8x256xf32, #tpu.memory_space<vmem>>, %arg7: memref<1x8x128xf32, #tpu.memory_space<vmem>>, %arg8: memref<256x128xf32, #tpu.memory_space<vmem>>) attributes {dimension_semantics = [#tpu.dimension_semantics<parallel>, #tpu.dimension_semantics<arbitrary>], iteration_bounds = array<i64: 1, 1>, scalar_prefetch = 0 : i64, scratch_operands = 1 : i64, tpu.core_type = #tpu.core_type<tc>, window_params = [{pipeline_mode = #tpu.pipeline_mode<synchronous>, transform_indices = @transform_0, window_bounds = array<i64: 256, 128>}, {pipeline_mode = #tpu.pipeline_mode<synchronous>, transform_indices = @transform_1, window_bounds = array<i64: 128, 128>}, {transform_indices = @transform_2, window_bounds = array<i64: 256, 256>}, {pipeline_mode = #tpu.pipeline_mode<synchronous>, transform_indices = @transform_3, window_bounds = array<i64: 1, 128>}, {transform_indices = @transform_4, window_bounds = array<i64: 8, 256>}, {transform_indices = @transform_5, window_bounds = array<i64: 1, 8, 128>}]} {
    %c0_i32 = arith.constant 0 : i32
    %0 = arith.cmpi eq, %arg1, %c0_i32 : i32
    %1 = arith.extui %0 : i1 to i32
    %c0_i32_0 = arith.constant 0 : i32
    %2 = arith.cmpi ne, %1, %c0_i32_0 : i32
    scf.if %2 {
      %cst_12 = arith.constant 0.000000e+00 : f32
      %18 = vector.broadcast %cst_12 : f32 to vector<256x128xf32>
      %c0_13 = arith.constant 0 : index
      %c0_14 = arith.constant 0 : index
      %19 = vector.load %arg8[%c0_13, %c0_14] : memref<256x128xf32, #tpu.memory_space<vmem>>, vector<256x128xf32>
      tpu.vector_store %arg8[%c0_13, %c0_14], %18 {strides = array<i32>} : memref<256x128xf32, #tpu.memory_space<vmem>>, vector<256x128xf32>,
    } else {
    }
    %c256_i32 = arith.constant 256 : i32
    %3 = arith.muli %arg1, %c256_i32 : i32
    %4 = tpu.assume_multiple %3, 256 : i32
    %5 = arith.index_cast %4 : i32 to index
    %c0 = arith.constant 0 : index
    %6 = vector.load %arg2[%5, %c0] : memref<256x128xbf16, #tpu.memory_space<vmem>>, vector<256x128xbf16>
    %c0_1 = arith.constant 0 : index
    %c0_2 = arith.constant 0 : index
    %7 = vector.load %arg3[%c0_1, %c0_2] : memref<128x128xbf16, #tpu.memory_space<vmem>>, vector<128x128xbf16>
    %cst = arith.constant dense<0.000000e+00> : vector<256x128xf32>
    %8 = tpu.matmul %6, %7, %cst {dimension_numbers = #tpu.dot_dimension_numbers<[1], [0], [0], [1], [0, 0, 1, 1], [], []>} : vector<256x128xbf16>, vector<128x128xbf16>, vector<256x128xf32> -> vector<256x128xf32>
    %9 = arith.truncf %8 : vector<256x128xf32> to vector<256x128xbf16>
    %c0_3 = arith.constant 0 : index
    %c0_4 = arith.constant 0 : index
    %10 = vector.load %arg8[%c0_3, %c0_4] : memref<256x128xf32, #tpu.memory_space<vmem>>, vector<256x128xf32>
    %c0_5 = arith.constant 0 : index
    %c0_6 = arith.constant 0 : index
    %11 = vector.load %arg4[%c0_5, %c0_6] : memref<256x256xbf16, #tpu.memory_space<vmem>>, vector<256x256xbf16>
    %cst_7 = arith.constant dense<0.000000e+00> : vector<256x128xf32>
    %12 = tpu.matmul %11, %9, %cst_7 {dimension_numbers = #tpu.dot_dimension_numbers<[1], [0], [0], [1], [0, 0, 1, 1], [], []>} : vector<256x256xbf16>, vector<256x128xbf16>, vector<256x128xf32> -> vector<256x128xf32>
    %13 = arith.addf %10, %12 : vector<256x128xf32>
    %c0_8 = arith.constant 0 : index
    %c0_9 = arith.constant 0 : index
    %14 = vector.load %arg8[%c0_8, %c0_9] : memref<256x128xf32, #tpu.memory_space<vmem>>, vector<256x128xf32>
    tpu.vector_store %arg8[%c0_8, %c0_9], %13 {strides = array<i32>} : memref<256x128xf32, #tpu.memory_space<vmem>>, vector<256x128xf32>,
    %c0_i32_10 = arith.constant 0 : i32
    %15 = arith.cmpi eq, %arg1, %c0_i32_10 : i32
    %16 = arith.extui %15 : i1 to i32
    %c0_i32_11 = arith.constant 0 : i32
    %17 = arith.cmpi ne, %16, %c0_i32_11 : i32
    scf.if %17 {
      %c0_12 = arith.constant 0 : index
      %c0_13 = arith.constant 0 : index
      %18 = vector.load %arg8[%c0_12, %c0_13] : memref<256x128xf32, #tpu.memory_space<vmem>>, vector<256x128xf32>
      %c0_14 = arith.constant 0 : index
      %c0_15 = arith.constant 0 : index
      %19 = vector.load %arg5[%c0_14, %c0_15] : memref<1x128xf32, #tpu.memory_space<vmem>>, vector<1x128xf32>
      %20 = vector.broadcast %19 : vector<1x128xf32> to vector<256x128xf32>
      %21 = arith.addf %18, %20 : vector<256x128xf32>
      %cst_16 = arith.constant 0.000000e+00 : f32
      %22 = vector.broadcast %cst_16 : f32 to vector<256x128xf32>
      %23 = arith.maximumf %21, %22 : vector<256x128xf32>
      %c0_17 = arith.constant 0 : index
      %c0_18 = arith.constant 0 : index
      %24 = vector.load %arg6[%c0_17, %c0_18] : memref<8x256xf32, #tpu.memory_space<vmem>>, vector<8x256xf32>
      %cst_19 = arith.constant dense<0.000000e+00> : vector<8x128xf32>
      %25 = tpu.matmul %24, %23, %cst_19 {dimension_numbers = #tpu.dot_dimension_numbers<[1], [0], [0], [1], [0, 0, 1, 1], [], []>} : vector<8x256xf32>, vector<256x128xf32>, vector<8x128xf32> -> vector<8x128xf32>
      %c0_20 = arith.constant 0 : index
      %c0_21 = arith.constant 0 : index
      %c0_22 = arith.constant 0 : index
      %26 = vector.load %arg7[%c0_20, %c0_21, %c0_22] : memref<1x8x128xf32, #tpu.memory_space<vmem>>, vector<1x8x128xf32>
      %27 = vector.shape_cast %26 : vector<1x8x128xf32> to vector<8x128xf32>
      %28 = vector.shape_cast %25 : vector<8x128xf32> to vector<1x8x128xf32>
      tpu.vector_store %arg7[%c0_20, %c0_21, %c0_22], %28 {strides = array<i32>} : memref<1x8x128xf32, #tpu.memory_space<vmem>>, vector<1x8x128xf32>,
    } else {
    }
    return
  }
  func.func @transform_0(%arg0: i32, %arg1: i32) -> (i32, i32) {
    %c0_i32 = arith.constant 0 : i32
    %c0_i32_0 = arith.constant 0 : i32
    %c0_i32_1 = arith.constant 0 : i32
    return %c0_i32, %c0_i32_0 : i32, i32
  }
  func.func @transform_1(%arg0: i32, %arg1: i32) -> (i32, i32) {
    %c0_i32 = arith.constant 0 : i32
    %c0_i32_0 = arith.constant 0 : i32
    %c0_i32_1 = arith.constant 0 : i32
    return %c0_i32, %c0_i32_0 : i32, i32
  }
  func.func @transform_2(%arg0: i32, %arg1: i32) -> (i32, i32) {
    %c0_i32 = arith.constant 0 : i32
    return %arg0, %arg1 : i32, i32
  }
  func.func @transform_3(%arg0: i32, %arg1: i32) -> (i32, i32) {
    %c0_i32 = arith.constant 0 : i32
    %c0_i32_0 = arith.constant 0 : i32
    %c0_i32_1 = arith.constant 0 : i32
    return %c0_i32, %c0_i32_0 : i32, i32
  }
  func.func @transform_4(%arg0: i32, %arg1: i32) -> (i32, i32) {
    %c0_i32 = arith.constant 0 : i32
    %c0_i32_0 = arith.constant 0 : i32
    return %c0_i32, %arg0 : i32, i32
  }
  func.func @transform_5(%arg0: i32, %arg1: i32) -> (i32, i32, i32) {
    %c0_i32 = arith.constant 0 : i32
    %c0_i32_0 = arith.constant 0 : i32
    %c0_i32_1 = arith.constant 0 : i32
    return %arg0, %c0_i32, %c0_i32_0 : i32, i32, i32
  }
}

</mosaic_0001>

<bundles_post_ra>
// kernel: gcn_forward.5
= control target key start
LH: loop header
LB: loop body
LE: loop exit
PB: predicated region body
PF: predicated region fallthrough
CT: control target
= control target key end

     0   :  { %v643_v0 = vmov 0.0   ;;  %vm644_vm0 = vmmov 0   ;;  %s977_s1 = inlined_call_operand.vmem [shape: f32[128,128], index: 1, kind: input, shape index: {}]   ;;  %s978_s3 = inlined_call_operand.vmem [shape: f32[128,128], index: 3, kind: input, shape index: {}]   ;;  %s979_s0 = inlined_call_operand.vmem [shape: f32[1,8,128], index: 0, kind: input, shape index: {}]   ;;  %s980_s5 = inlined_call_operand.vmem [shape: f32[128,128], index: 5, kind: input, shape index: {}]   ;;  %s981_s2 = inlined_call_operand.vmem [shape: f32[1,128], index: 2, kind: input, shape index: {}]   ;;  %s982_s7 = inlined_call_operand.vmem [shape: f32[128,128], index: 7, kind: input, shape index: {}]   ;;  %s983_s4 = inlined_call_operand.vmem [shape: f32[1,128], index: 4, kind: input, shape index: {}]   ;;  %s984_s6 = inlined_call_operand.vmem [shape: f32[1,128], index: 6, kind: input, shape index: {}]   ;;  %s985_s8 = inlined_call_operand.vmem [shape: f32[1,128], index: 8, kind: input, shape index: {}]   ;;  %s986_s9 = inlined_call_operand.vmem [shape: f32[8,128], index: 9, kind: output, shape index: {}]  }
   0x1   :  { %497 = vmatprep.subr.mxu0 %v643_v0  ;;  %v49_v1 = vld [vmem:[%s977_s1 + $0x78] sm:$0xff]  ;;  %v48_v2 = vld [vmem:[%s977_s1 + $0x70] sm:$0xff]  ;;  %529 = vmatprep.mubr.msk.f32.mxu0 %vm644_vm0, %v643_v0  ;;  %v47_v3 = vld [vmem:[%s977_s1 + $0x68] sm:$0xff] }
   0x2   :  { %498 = vmatpush3.msra.mxu0 %v49_v1  ;;  %532 = vmatprep.subr.mxu1 %v643_v0  ;;  %v46_v4 = vld [vmem:[%s977_s1 + $0x60] sm:$0xff]  ;;  %v143_v5 = vld [vmem:[%s978_s3 + $0x78] sm:$0xff]  ;;  %v142_v7 = vld [vmem:[%s978_s3 + $0x70] sm:$0xff] }
   0x3   :  { %499 = vmatprep.subr.mxu0 %v643_v0  ;;  %564 = vmatprep.mubr.msk.f32.mxu1 %vm644_vm0, %v643_v0  ;;  %v45_v6 = vld [vmem:[%s977_s1 + $0x58] sm:$0xff]  ;;  %v141_v8 = vld [vmem:[%s978_s3 + $0x68] sm:$0xff]  ;;  %v44_v9 = vld [vmem:[%s977_s1 + $0x50] sm:$0xff] }
   0x4   :  { %500 = vmatpush3.msra.mxu0 %v48_v2  ;;  %533 = vmatpush3.msra.mxu1 %v143_v5  ;;  %v140_v10 = vld [vmem:[%s978_s3 + $0x60] sm:$0xff]  ;;  %v43_v11 = vld [vmem:[%s977_s1 + $0x48] sm:$0xff]  ;;  %v139_v12 = vld [vmem:[%s978_s3 + $0x58] sm:$0xff] }
   0x5   :  { %501 = vmatprep.subr.mxu0 %v643_v0  ;;  %534 = vmatprep.subr.mxu1 %v643_v0  ;;  %v42_v13 = vld [vmem:[%s977_s1 + $0x40] sm:$0xff]  ;;  %v138_v14 = vld [vmem:[%s978_s3 + $0x50] sm:$0xff]  ;;  %v41_v15 = vld [vmem:[%s977_s1 + $0x38] sm:$0xff] }
   0x6   :  { %502 = vmatpush3.msra.mxu0 %v47_v3  ;;  %535 = vmatpush3.msra.mxu1 %v142_v7  ;;  %v137_v16 = vld [vmem:[%s978_s3 + $0x48] sm:$0xff]  ;;  %v40_v17 = vld [vmem:[%s977_s1 + $0x30] sm:$0xff]  ;;  %v136_v18 = vld [vmem:[%s978_s3 + $0x40] sm:$0xff] }
   0x7   :  { %503 = vmatprep.subr.mxu0 %v643_v0  ;;  %536 = vmatprep.subr.mxu1 %v643_v0  ;;  %v39_v19 = vld [vmem:[%s977_s1 + $0x28] sm:$0xff]  ;;  %v135_v20 = vld [vmem:[%s978_s3 + $0x38] sm:$0xff]  ;;  %v38_v21 = vld [vmem:[%s977_s1 + $0x20] sm:$0xff] }
   0x8   :  { %504 = vmatpush3.msra.mxu0 %v46_v4  ;;  %537 = vmatpush3.msra.mxu1 %v141_v8  ;;  %v134_v22 = vld [vmem:[%s978_s3 + $0x30] sm:$0xff]  ;;  %v37_v23 = vld [vmem:[%s977_s1 + $0x18] sm:$0xff]  ;;  %v133_v24 = vld [vmem:[%s978_s3 + $0x28] sm:$0xff] }
   0x9   :  { %505 = vmatprep.subr.mxu0 %v643_v0  ;;  %538 = vmatprep.subr.mxu1 %v643_v0  ;;  %v36_v25 = vld [vmem:[%s977_s1 + $0x10] sm:$0xff]  ;;  %v132_v26 = vld [vmem:[%s978_s3 + $0x20] sm:$0xff]  ;;  %v35_v27 = vld [vmem:[%s977_s1 + $0x8] sm:$0xff] }
   0xa   :  { %506 = vmatpush3.msra.mxu0 %v45_v6  ;;  %539 = vmatpush3.msra.mxu1 %v140_v10  ;;  %v131_v28 = vld [vmem:[%s978_s3 + $0x18] sm:$0xff]  ;;  %v34_v29 = vld [vmem:[%s977_s1] sm:$0xff]  ;;  %v130_v31 = vld [vmem:[%s978_s3 + $0x10] sm:$0xff] }
   0xb   :  { %507 = vmatprep.subr.mxu0 %v643_v0  ;;  %540 = vmatprep.subr.mxu1 %v643_v0  ;;  %v32_v30 = vld [vmem:[%s979_s0] sm:$0xff]  ;;  %v129_v32 = vld [vmem:[%s978_s3 + $0x8] sm:$0xff]  ;;  %v237_v34 = vld [vmem:[%s980_s5 + $0x78] sm:$0xff] }
   0xc   :  { %508 = vmatpush3.msra.mxu0 %v44_v9  ;;  %541 = vmatpush3.msra.mxu1 %v139_v12  ;;  %v128_v33 = vld [vmem:[%s978_s3] sm:$0xff]  ;;  %v236_v35 = vld [vmem:[%s980_s5 + $0x70] sm:$0xff]  ;;  %v235_v36 = vld [vmem:[%s980_s5 + $0x68] sm:$0xff] }
   0xd   :  { %509 = vmatprep.subr.mxu0 %v643_v0  ;;  %542 = vmatprep.subr.mxu1 %v643_v0  ;;  %v234_v37 = vld [vmem:[%s980_s5 + $0x60] sm:$0xff]  ;;  %v233_v38 = vld [vmem:[%s980_s5 + $0x58] sm:$0xff]  ;;  %v232_v39 = vld [vmem:[%s980_s5 + $0x50] sm:$0xff] }
   0xe   :  { %510 = vmatpush3.msra.mxu0 %v43_v11  ;;  %543 = vmatpush3.msra.mxu1 %v138_v14  ;;  %v231_v40 = vld [vmem:[%s980_s5 + $0x48] sm:$0xff]  ;;  %v230_v41 = vld [vmem:[%s980_s5 + $0x40] sm:$0xff]  ;;  %v229_v42 = vld [vmem:[%s980_s5 + $0x38] sm:$0xff] }
   0xf   :  { %511 = vmatprep.subr.mxu0 %v643_v0  ;;  %544 = vmatprep.subr.mxu1 %v643_v0  ;;  %v228_v43 = vld [vmem:[%s980_s5 + $0x30] sm:$0xff]  ;;  %v227_v44 = vld [vmem:[%s980_s5 + $0x28] sm:$0xff]  ;;  %v226_v45 = vld [vmem:[%s980_s5 + $0x20] sm:$0xff] }
  0x10   :  { %512 = vmatpush3.msra.mxu0 %v42_v13  ;;  %545 = vmatpush3.msra.mxu1 %v137_v16  ;;  %v225_v46 = vld [vmem:[%s980_s5 + $0x18] sm:$0xff]  ;;  %v425_v47 = vld [vmem:[%s981_s2] ss:$0 sm:$0xff]  ;;  %v224_v52 = vld [vmem:[%s980_s5 + $0x10] sm:$0xff] }
  0x11   :  { %513 = vmatprep.subr.mxu0 %v643_v0  ;;  %546 = vmatprep.subr.mxu1 %v643_v0  ;;  %v223_v53 = vld [vmem:[%s980_s5 + $0x8] sm:$0xff]  ;;  %v222_v54 = vld [vmem:[%s980_s5] sm:$0xff]  ;;  %v331_v55 = vld [vmem:[%s982_s7 + $0x78] sm:$0xff] }
  0x12   :  { %514 = vmatpush3.msra.mxu0 %v41_v15  ;;  %547 = vmatpush3.msra.mxu1 %v136_v18  ;;  %v330_v56 = vld [vmem:[%s982_s7 + $0x70] sm:$0xff]  ;;  %v329_v57 = vld [vmem:[%s982_s7 + $0x68] sm:$0xff]  ;;  %v328_v58 = vld [vmem:[%s982_s7 + $0x60] sm:$0xff] }
  0x13   :  { %515 = vmatprep.subr.mxu0 %v643_v0  ;;  %548 = vmatprep.subr.mxu1 %v643_v0  ;;  %v327_v59 = vld [vmem:[%s982_s7 + $0x58] sm:$0xff]  ;;  %v326_v60 = vld [vmem:[%s982_s7 + $0x50] sm:$0xff]  ;;  %v325_v61 = vld [vmem:[%s982_s7 + $0x48] sm:$0xff] }
  0x14   :  { %516 = vmatpush3.msra.mxu0 %v40_v17  ;;  %549 = vmatpush3.msra.mxu1 %v135_v20  ;;  %v324_v62 = vld [vmem:[%s982_s7 + $0x40] sm:$0xff]  ;;  %v323_v63 = vld [vmem:[%s982_s7 + $0x38] sm:$0xff]  ;;  %v322_v1 = vld [vmem:[%s982_s7 + $0x30] sm:$0xff] }
  0x15   :  { %517 = vmatprep.subr.mxu0 %v643_v0  ;;  %550 = vmatprep.subr.mxu1 %v643_v0  ;;  %v321_v2 = vld [vmem:[%s982_s7 + $0x28] sm:$0xff]  ;;  %v320_v3 = vld [vmem:[%s982_s7 + $0x20] sm:$0xff]  ;;  %v319_v4 = vld [vmem:[%s982_s7 + $0x18] sm:$0xff] }
  0x16   :  { %518 = vmatpush3.msra.mxu0 %v39_v19  ;;  %551 = vmatpush3.msra.mxu1 %v134_v22  ;;  %v426_v5 = vld [vmem:[%s983_s4] ss:$0 sm:$0xff]  ;;  %v318_v10 = vld [vmem:[%s982_s7 + $0x10] sm:$0xff]  ;;  %v317_v11 = vld [vmem:[%s982_s7 + $0x8] sm:$0xff] }
  0x17   :  { %519 = vmatprep.subr.mxu0 %v643_v0  ;;  %552 = vmatprep.subr.mxu1 %v643_v0  ;;  %v316_v12 = vld [vmem:[%s982_s7] sm:$0xff] }
  0x18   :  { %520 = vmatpush3.msra.mxu0 %v38_v21  ;;  %553 = vmatpush3.msra.mxu1 %v133_v24  ;;  %v427_v13 = vld [vmem:[%s984_s6] ss:$0 sm:$0xff] }
  0x19   :  { %521 = vmatprep.subr.mxu0 %v643_v0  ;;  %554 = vmatprep.subr.mxu1 %v643_v0  ;;  %v428_v18 = vld [vmem:[%s985_s8] ss:$0 sm:$0xff] }
  0x1a   :  { %522 = vmatpush3.msra.mxu0 %v37_v23  ;;  %555 = vmatpush3.msra.mxu1 %v132_v26 }
  0x1b   :  { %523 = vmatprep.subr.mxu0 %v643_v0  ;;  %556 = vmatprep.subr.mxu1 %v643_v0 }
  0x1c   :  { %524 = vmatpush3.msra.mxu0 %v36_v25  ;;  %557 = vmatpush3.msra.mxu1 %v131_v28 }
  0x1d   :  { %525 = vmatprep.subr.mxu0 %v643_v0  ;;  %558 = vmatprep.subr.mxu1 %v643_v0 }
  0x1e   :  { %526 = vmatpush3.msra.mxu0 %v35_v27  ;;  %559 = vmatpush3.msra.mxu1 %v130_v31 }
  0x1f   :  { %527 = vmatprep.subr.mxu0 %v643_v0  ;;  %560 = vmatprep.subr.mxu1 %v643_v0 }
  0x20   :  { %528 = vmatpush3.msra.mxu0 %v34_v29  ;;  %561 = vmatpush3.msra.mxu1 %v129_v32 }
  0x21   :  { %530 = vmatmul.mubr.f32.vlgmr.msra.gmra.mxu0 %v32_v30  ;;  %567 = vmatprep.subr.mxu0 %v643_v0 }
  0x22   :  { %599 = vmatprep.mubr.msk.f32.mxu0 %vm644_vm0, %v643_v0  ;;  %562 = vmatprep.subr.mxu1 %v643_v0 }
  0x23   :  { %563 = vmatpush3.msra.mxu1 %v128_v33  ;;  %568 = vmatpush3.msra.mxu0 %v237_v34 }
  0x24   :  { %602 = vmatprep.subr.mxu1 %v643_v0  ;;  %569 = vmatprep.subr.mxu0 %v643_v0 }
  0x25   :  { %570 = vmatpush3.msra.mxu0 %v236_v35 }
  0x26   :  { %571 = vmatprep.subr.mxu0 %v643_v0 }
  0x27   :  { %572 = vmatpush3.msra.mxu0 %v235_v36 }
  0x28   :  { %573 = vmatprep.subr.mxu0 %v643_v0 }
  0x29   :  { %574 = vmatpush3.msra.mxu0 %v234_v37 }
  0x2a   :  { %575 = vmatprep.subr.mxu0 %v643_v0 }
  0x2b   :  { %576 = vmatpush3.msra.mxu0 %v233_v38 }
  0x2c   :  { %577 = vmatprep.subr.mxu0 %v643_v0 }
  0x2d   :  { %578 = vmatpush3.msra.mxu0 %v232_v39 }
  0x2e   :  { %579 = vmatprep.subr.mxu0 %v643_v0 }
  0x2f   :  { %580 = vmatpush3.msra.mxu0 %v231_v40 }
  0x30   :  { %581 = vmatprep.subr.mxu0 %v643_v0 }
  0x31   :  { %582 = vmatpush3.msra.mxu0 %v230_v41 }
  0x32   :  { %583 = vmatprep.subr.mxu0 %v643_v0 }
  0x33   :  { %584 = vmatpush3.msra.mxu0 %v229_v42 }
  0x34   :  { %585 = vmatprep.subr.mxu0 %v643_v0 }
  0x35   :  { %586 = vmatpush3.msra.mxu0 %v228_v43 }
  0x36   :  { %587 = vmatprep.subr.mxu0 %v643_v0 }
  0x37   :  { %588 = vmatpush3.msra.mxu0 %v227_v44 }
  0x38   :  { %589 = vmatprep.subr.mxu0 %v643_v0 }
  0x39   :  { %590 = vmatpush3.msra.mxu0 %v226_v45 }
  0x3a   :  { %591 = vmatprep.subr.mxu0 %v643_v0 }
  0x3b   :  { %592 = vmatpush3.msra.mxu0 %v225_v46 }
  0x3c   :  { %593 = vmatprep.subr.mxu0 %v643_v0 }
  0x3d   :  { %594 = vmatpush3.msra.mxu0 %v224_v52 }
  0x3e   :  { %595 = vmatprep.subr.mxu0 %v643_v0 }
  0x3f   :  { %596 = vmatpush3.msra.mxu0 %v223_v53 }
  0x40   :  { %597 = vmatprep.subr.mxu0 %v643_v0 }
  0x41   :  { %598 = vmatpush3.msra.mxu0 %v222_v54 }
  0xe1   :  { %v123_v48 = vpop.f32.mrf.mxu0 }
  0xe2   :  { %v124_v49 = vadd.f32 %v425_v47, %v123_v48 }
  0xe3   :  { %v531_v50 = vpop.f32.mrf.mxu0 }
  0xe4   :  { %v127_v51 = vmax.f32 %v124_v49, 0.0 }
  0xe6   :  { %565 = vmatmul.mubr.f32.vlgmr.msra.gmra.mxu1 %v127_v51 }
  0xe7   :  { %634 = vmatprep.mubr.msk.f32.mxu1 %vm644_vm0, %v643_v0  ;;  %603 = vmatpush3.msra.mxu1 %v331_v55 }
  0xe8   :  { %604 = vmatprep.subr.mxu1 %v643_v0 }
  0xe9   :  { %605 = vmatpush3.msra.mxu1 %v330_v56 }
  0xea   :  { %606 = vmatprep.subr.mxu1 %v643_v0 }
  0xeb   :  { %607 = vmatpush3.msra.mxu1 %v329_v57 }
  0xec   :  { %608 = vmatprep.subr.mxu1 %v643_v0 }
  0xed   :  { %609 = vmatpush3.msra.mxu1 %v328_v58 }
  0xee   :  { %610 = vmatprep.subr.mxu1 %v643_v0 }
  0xef   :  { %611 = vmatpush3.msra.mxu1 %v327_v59 }
  0xf0   :  { %612 = vmatprep.subr.mxu1 %v643_v0 }
  0xf1   :  { %613 = vmatpush3.msra.mxu1 %v326_v60 }
  0xf2   :  { %614 = vmatprep.subr.mxu1 %v643_v0 }
  0xf3   :  { %615 = vmatpush3.msra.mxu1 %v325_v61 }
  0xf4   :  { %616 = vmatprep.subr.mxu1 %v643_v0 }
  0xf5   :  { %617 = vmatpush3.msra.mxu1 %v324_v62 }
  0xf6   :  { %618 = vmatprep.subr.mxu1 %v643_v0 }
  0xf7   :  { %619 = vmatpush3.msra.mxu1 %v323_v63 }
  0xf8   :  { %620 = vmatprep.subr.mxu1 %v643_v0 }
  0xf9   :  { %621 = vmatpush3.msra.mxu1 %v322_v1 }
  0xfa   :  { %622 = vmatprep.subr.mxu1 %v643_v0 }
  0xfb   :  { %623 = vmatpush3.msra.mxu1 %v321_v2 }
  0xfc   :  { %624 = vmatprep.subr.mxu1 %v643_v0 }
  0xfd   :  { %625 = vmatpush3.msra.mxu1 %v320_v3 }
  0xfe   :  { %626 = vmatprep.subr.mxu1 %v643_v0 }
  0xff   :  { %627 = vmatpush3.msra.mxu1 %v319_v4 }
 0x100   :  { %628 = vmatprep.subr.mxu1 %v643_v0 }
 0x101   :  { %629 = vmatpush3.msra.mxu1 %v318_v10 }
 0x102   :  { %630 = vmatprep.subr.mxu1 %v643_v0 }
 0x103   :  { %631 = vmatpush3.msra.mxu1 %v317_v11 }
 0x104   :  { %632 = vmatprep.subr.mxu1 %v643_v0 }
 0x105   :  { %633 = vmatpush3.msra.mxu1 %v316_v12 }
 0x1a6   :  { %v217_v6 = vpop.f32.mrf.mxu1 }
 0x1a7   :  { %v218_v7 = vadd.f32 %v426_v5, %v217_v6 }
 0x1a8   :  { %v566_v8 = vpop.f32.mrf.mxu1 }
 0x1a9   :  { %v221_v9 = vmax.f32 %v218_v7, 0.0 }
 0x1ab   :  { %600 = vmatmul.mubr.f32.vlgmr.msra.gmra.mxu0 %v221_v9 }
 0x26b   :  { %v311_v14 = vpop.f32.mrf.mxu0 }
 0x26c   :  { %v312_v15 = vadd.f32 %v427_v13, %v311_v14 }
 0x26d   :  { %v601_v16 = vpop.f32.mrf.mxu0 }
 0x26e   :  { %v315_v17 = vmax.f32 %v312_v15, 0.0 }
 0x270   :  { %635 = vmatmul.mubr.f32.vlgmr.msra.gmra.mxu1 %v315_v17 }
 0x330   :  { %v405_v19 = vpop.f32.mrf.mxu1 }
 0x331   :  { %v406_v0 = vadd.f32 %v428_v18, %v405_v19 }
 0x332   :  { %v636_v20 = vpop.f32.mrf.mxu1 }
 0x333   :  { %409 = vmax.xlane.f32.xlu0 %v406_v0 }
 0x3bc   :  { %v410_v21 = vpop.xlane.xlu0 %409 }
 0x3bd   :  { %v411_v22 = vsub.f32 %v406_v0, %v410_v21 }
 0x3bf   :  { %v412_v23 = vmul.f32 1.442695, %v411_v22 }
 0x3c1   :  { %639 = vpow2.f32 %v412_v23 }
 0x3ce   :  { %v640_v24 = vpop.eup %639 }
 0x3cf   :  { %414 = vadd.xlane.f32.xlu0 %v640_v24 }
 0x458   :  { %v415_v25 = vpop.xlane.xlu0 %414 }
 0x459   :  { %641 = vlog2.f32 %v415_v25 }
 0x466   :  { %v642_v26 = vpop.eup %641 }
 0x467   :  { %v417_v27 = vmul.f32 0.6931472, %v642_v26 }
 0x469   :  { %v418_v28 = vadd.f32 %v417_v27, %v410_v21 }
 0x46b   :  { %v419_v29 = vsub.f32 %v406_v0, %v418_v28 }
 0x46d   :  { %420 = vst [vmem:[%s986_s9] sm:$0xff] %v419_v29 }

// kernel: gcn_forward.4
= control target key start
LH: loop header
LB: loop body
LE: loop exit
PB: predicated region body
PF: predicated region fallthrough
CT: control target
= control target key end

     0   :  { %s1723_s1 = inlined_call_operand.vmem [shape: bf16[128,128], index: 1, kind: input, shape index: {}]   ;;  %s1724_s0 = inlined_call_operand.vmem [shape: bf16[256,128], index: 0, kind: input, shape index: {}]   ;;  %s1725_s2 = inlined_call_operand.vmem [shape: bf16[256,256], index: 2, kind: input, shape index: {}]   ;;  %s1726_s4 = inlined_call_operand.vmem [shape: f32[8,256], index: 4, kind: input, shape index: {}]   ;;  %s1727_s3 = inlined_call_operand.vmem [shape: f32[1,128], index: 3, kind: input, shape index: {}]   ;;  %s1728_s5 = inlined_call_operand.vmem [shape: f32[1,8,128], index: 5, kind: output, shape index: {}]  }
   0x1   :  { %v1341_v0 = vld [vmem:[%s1723_s1 + $0x38] sm:$0xff]   ;;  %v1342_v1 = vld [vmem:[%s1723_s1 + $0x30] sm:$0xff]   ;;  %v1343_v2 = vld [vmem:[%s1723_s1 + $0x28] sm:$0xff]  }
   0x2   :  { %1293 = vmatprep.subr.bf16.mxu0 %v1341_v0  ;;  %v1344_v3 = vld [vmem:[%s1723_s1 + $0x20] sm:$0xff]   ;;  %v1345_v5 = vld [vmem:[%s1723_s1 + $0x18] sm:$0xff]   ;;  %v1346_v6 = vld [vmem:[%s1723_s1 + $0x10] sm:$0xff]  }
   0x3   :  { %1294 = vmatpush3.bf16.msra.mxu0 %v1341_v0  ;;  %v1349_v4 = vld [vmem:[%s1724_s0] sm:$0xff]   ;;  %v1347_v7 = vld [vmem:[%s1723_s1 + $0x8] sm:$0xff]   ;;  %v1351_v10 = vld [vmem:[%s1724_s0 + $0x10] sm:$0xff]  }
   0x4   :  { %1295 = vmatprep.subr.bf16.mxu0 %v1342_v1  ;;  %1309 = vmatprep.mubr.bf16.mxu0 %v1349_v4  ;;  %v1348_v8 = vld [vmem:[%s1723_s1] sm:$0xff]   ;;  %v1350_v9 = vld [vmem:[%s1724_s0 + $0x8] sm:$0xff]   ;;  %v1352_v11 = vld [vmem:[%s1724_s0 + $0x18] sm:$0xff]  }
   0x5   :  { %v1353_v12 = vld [vmem:[%s1724_s0 + $0x20] sm:$0xff]   ;;  %v1354_v13 = vld [vmem:[%s1724_s0 + $0x28] sm:$0xff]   ;;  %v1355_v14 = vld [vmem:[%s1724_s0 + $0x30] sm:$0xff]  }
   0x6   :  { %v1356_v15 = vld [vmem:[%s1724_s0 + $0x38] sm:$0xff]   ;;  %v1357_v16 = vld [vmem:[%s1724_s0 + $0x40] sm:$0xff]   ;;  %v1358_v17 = vld [vmem:[%s1724_s0 + $0x48] sm:$0xff]  }
   0x7   :  { %1296 = vmatpush3.bf16.msra.mxu0 %v1342_v1  ;;  %v1359_v18 = vld [vmem:[%s1724_s0 + $0x50] sm:$0xff]   ;;  %v1360_v19 = vld [vmem:[%s1724_s0 + $0x58] sm:$0xff]   ;;  %v1361_v20 = vld [vmem:[%s1724_s0 + $0x60] sm:$0xff]  }
   0x8   :  { %1297 = vmatprep.subr.bf16.mxu0 %v1343_v2  ;;  %v1362_v21 = vld [vmem:[%s1724_s0 + $0x68] sm:$0xff]   ;;  %v1363_v22 = vld [vmem:[%s1724_s0 + $0x70] sm:$0xff]   ;;  %v1364_v23 = vld [vmem:[%s1724_s0 + $0x78] sm:$0xff]  }
   0x9   :  { %v1367_v24 = vld [vmem:[%s1725_s2 + $0x4] ss:$8 sps:$4 sm:$0xff]  }
   0xa   :  { %687 = vmatprep.mubr.bf16.mxu1 %v1367_v24  ;;  %v1389_v24 = vld [vmem:[%s1725_s2 + $0x84] ss:$8 sps:$4 sm:$0xff]  }
   0xb   :  { %1298 = vmatpush3.bf16.msra.mxu0 %v1343_v2 }
   0xc   :  { %1299 = vmatprep.subr.bf16.mxu0 %v1344_v3 }
   0xf   :  { %1300 = vmatpush3.bf16.msra.mxu0 %v1344_v3 }
  0x10   :  { %1301 = vmatprep.subr.bf16.mxu0 %v1345_v5 }
  0x13   :  { %1302 = vmatpush3.bf16.msra.mxu0 %v1345_v5 }
  0x14   :  { %1303 = vmatprep.subr.bf16.mxu0 %v1346_v6 }
  0x17   :  { %1304 = vmatpush3.bf16.msra.mxu0 %v1346_v6 }
  0x18   :  { %1305 = vmatprep.subr.bf16.mxu0 %v1347_v7 }
  0x1b   :  { %1306 = vmatpush3.bf16.msra.mxu0 %v1347_v7 }
  0x1c   :  { %1307 = vmatprep.subr.bf16.mxu0 %v1348_v8 }
  0x1f   :  { %1308 = vmatpush3.bf16.msra.mxu0 %v1348_v8 }
  0x22   :  { %1310 = vmatmul.mubr.bf16.vlgmr.msra.gmra.mxu0 %v1350_v9  ;;  %v1365_v9 = vld [vmem:[%s1725_s2] ss:$8 sps:$4 sm:$0xff]  }
  0x23   :  { %1313 = vmatprep.mubr.bf16.mxu0 %v1351_v10  ;;  %v1368_v10 = vld [vmem:[%s1725_s2 + $0x14] ss:$8 sps:$4 sm:$0xff]  }
  0x2a   :  { %1314 = vmatmul.mubr.bf16.gmra.mxu0 %v1352_v11  ;;  %v1370_v11 = vld [vmem:[%s1725_s2 + $0x10] ss:$8 sps:$4 sm:$0xff]  }
  0x2b   :  { %1317 = vmatprep.mubr.bf16.mxu0 %v1353_v12  ;;  %v1371_v12 = vld [vmem:[%s1725_s2 + $0x24] ss:$8 sps:$4 sm:$0xff]  }
  0x32   :  { %1318 = vmatmul.mubr.bf16.gmra.mxu0 %v1354_v13  ;;  %v1373_v13 = vld [vmem:[%s1725_s2 + $0x20] ss:$8 sps:$4 sm:$0xff]  }
  0x33   :  { %1321 = vmatprep.mubr.bf16.mxu0 %v1355_v14  ;;  %v1374_v14 = vld [vmem:[%s1725_s2 + $0x34] ss:$8 sps:$4 sm:$0xff]  }
  0x3a   :  { %1322 = vmatmul.mubr.bf16.gmra.mxu0 %v1356_v15  ;;  %v1376_v15 = vld [vmem:[%s1725_s2 + $0x30] ss:$8 sps:$4 sm:$0xff]  }
  0x3b   :  { %1325 = vmatprep.mubr.bf16.mxu0 %v1357_v16  ;;  %v1377_v16 = vld [vmem:[%s1725_s2 + $0x44] ss:$8 sps:$4 sm:$0xff]  }
  0x42   :  { %1326 = vmatmul.mubr.bf16.gmra.mxu0 %v1358_v17  ;;  %v1379_v17 = vld [vmem:[%s1725_s2 + $0x40] ss:$8 sps:$4 sm:$0xff]  }
  0x43   :  { %1329 = vmatprep.mubr.bf16.mxu0 %v1359_v18  ;;  %v1380_v18 = vld [vmem:[%s1725_s2 + $0x54] ss:$8 sps:$4 sm:$0xff]  }
  0x4a   :  { %1330 = vmatmul.mubr.bf16.gmra.mxu0 %v1360_v19  ;;  %v1382_v19 = vld [vmem:[%s1725_s2 + $0x50] ss:$8 sps:$4 sm:$0xff]  }
  0x4b   :  { %1333 = vmatprep.mubr.bf16.mxu0 %v1361_v20  ;;  %v1383_v20 = vld [vmem:[%s1725_s2 + $0x64] ss:$8 sps:$4 sm:$0xff]  }
  0x52   :  { %1334 = vmatmul.mubr.bf16.gmra.mxu0 %v1362_v21  ;;  %v1385_v21 = vld [vmem:[%s1725_s2 + $0x60] ss:$8 sps:$4 sm:$0xff]  }
  0x53   :  { %1337 = vmatprep.mubr.bf16.mxu0 %v1363_v22  ;;  %v1386_v22 = vld [vmem:[%s1725_s2 + $0x74] ss:$8 sps:$4 sm:$0xff]  }
  0x5a   :  { %1338 = vmatmul.mubr.bf16.gmra.mxu0 %v1364_v23  ;;  %v1388_v23 = vld [vmem:[%s1725_s2 + $0x70] ss:$8 sps:$4 sm:$0xff]  }
  0xe2   :  { %v1311_v25 = vpop.f32.mrf.mxu0 }
  0xe4   :  { %v1518_v26 = vpop.f32.mrf.mxu0 }
  0xe6   :  { %v1312_v27 = vpop.f32.mrf.mxu0 }
  0xe7   :  { %v416_v28 = vpack.c.bf16 %v1312_v27, %v1311_v25  ;;  %v1391_v25 = vld [vmem:[%s1725_s2 + $0x80] ss:$8 sps:$4 sm:$0xff]   ;;  %v1394_v27 = vld [vmem:[%s1725_s2 + $0x90] ss:$8 sps:$4 sm:$0xff]  }
  0xe8   :  { %v291_v29 = vpop.f32.mrf.mxu0 }
  0xe9   :  { %v415_v30 = vpack.c.bf16 %v291_v29, %v1518_v26  ;;  %v1392_v26 = vld [vmem:[%s1725_s2 + $0x94] ss:$8 sps:$4 sm:$0xff]   ;;  %v1397_v29 = vld [vmem:[%s1725_s2 + $0xa0] ss:$8 sps:$4 sm:$0xff]  }
  0xea   :  { %v1315_v31 = vpop.f32.mrf.mxu0 }
  0xec   :  { %v304_v32 = vpop.f32.mrf.mxu0 }
  0xee   :  { %v1316_v33 = vpop.f32.mrf.mxu0 }
  0xef   :  { %v418_v34 = vpack.c.bf16 %v1316_v33, %v1315_v31  ;;  %v1400_v31 = vld [vmem:[%s1725_s2 + $0xb0] ss:$8 sps:$4 sm:$0xff]   ;;  %v1403_v33 = vld [vmem:[%s1725_s2 + $0xc0] ss:$8 sps:$4 sm:$0xff]  }
  0xf0   :  { %v307_v35 = vpop.f32.mrf.mxu0 }
  0xf1   :  { %v417_v36 = vpack.c.bf16 %v307_v35, %v304_v32  ;;  %v1401_v32 = vld [vmem:[%s1725_s2 + $0xc4] ss:$8 sps:$4 sm:$0xff]   ;;  %v1406_v35 = vld [vmem:[%s1725_s2 + $0xd0] ss:$8 sps:$4 sm:$0xff]  }
  0xf2   :  { %v1319_v37 = vpop.f32.mrf.mxu0 }
  0xf4   :  { %v320_v38 = vpop.f32.mrf.mxu0 }
  0xf6   :  { %v1320_v39 = vpop.f32.mrf.mxu0 }
  0xf7   :  { %v420_v2 = vpack.c.bf16 %v1320_v39, %v1319_v37  ;;  %v1409_v37 = vld [vmem:[%s1725_s2 + $0xe0] ss:$8 sps:$4 sm:$0xff]   ;;  %v1412_v39 = vld [vmem:[%s1725_s2 + $0xf0] ss:$8 sps:$4 sm:$0xff]  }
  0xf8   :  { %v323_v40 = vpop.f32.mrf.mxu0 }
  0xf9   :  { %v419_v4 = vpack.c.bf16 %v323_v40, %v320_v38  ;;  %v1410_v38 = vld [vmem:[%s1725_s2 + $0xf4] ss:$8 sps:$4 sm:$0xff]  }
  0xfa   :  { %v1323_v41 = vpop.f32.mrf.mxu0 }
  0xfc   :  { %v336_v42 = vpop.f32.mrf.mxu0 }
  0xfe   :  { %v1324_v43 = vpop.f32.mrf.mxu0 }
  0xff   :  { %v422_v61 = vpack.c.bf16 %v1324_v43, %v1323_v41 }
 0x100   :  { %v339_v44 = vpop.f32.mrf.mxu0 }
 0x101   :  { %v421_v0 = vpack.c.bf16 %v339_v44, %v336_v42 }
 0x102   :  { %v1327_v45 = vpop.f32.mrf.mxu0 }
 0x104   :  { %v352_v46 = vpop.f32.mrf.mxu0 }
 0x106   :  { %v1328_v47 = vpop.f32.mrf.mxu0 }
 0x107   :  { %v424_v7 = vpack.c.bf16 %v1328_v47, %v1327_v45 }
 0x108   :  { %v355_v48 = vpop.f32.mrf.mxu0 }
 0x109   :  { %v423_v8 = vpack.c.bf16 %v355_v48, %v352_v46 }
 0x10a   :  { %v1331_v49 = vpop.f32.mrf.mxu0 }
 0x10c   :  { %v368_v50 = vpop.f32.mrf.mxu0 }
 0x10e   :  { %v1332_v51 = vpop.f32.mrf.mxu0 }
 0x10f   :  { %v426_v5 = vpack.c.bf16 %v1332_v51, %v1331_v49 }
 0x110   :  { %v371_v52 = vpop.f32.mrf.mxu0 }
 0x111   :  { %v425_v6 = vpack.c.bf16 %v371_v52, %v368_v50 }
 0x112   :  { %v1335_v53 = vpop.f32.mrf.mxu0 }
 0x114   :  { %v384_v54 = vpop.f32.mrf.mxu0 }
 0x116   :  { %v1336_v55 = vpop.f32.mrf.mxu0 }
 0x117   :  { %v428_v1 = vpack.c.bf16 %v1336_v55, %v1335_v53 }
 0x118   :  { %v387_v56 = vpop.f32.mrf.mxu0 }
 0x119   :  { %v427_v3 = vpack.c.bf16 %v387_v56, %v384_v54 }
 0x11a   :  { %v1339_v57 = vpop.f32.mrf.mxu0 }
 0x11c   :  { %v400_v58 = vpop.f32.mrf.mxu0 }
 0x11e   :  { %v1340_v59 = vpop.f32.mrf.mxu0 }
 0x11f   :  { %v430_v60 = vpack.c.bf16 %v1340_v59, %v1339_v57 }
 0x120   :  { %v403_v62 = vpop.f32.mrf.mxu0 }
 0x121   :  { %v429_v63 = vpack.c.bf16 %v403_v62, %v400_v58  ;;  %1146 = vmatprep.subr.bf16.mxu1 %v430_v60 }
 0x122   :  { %1147 = vmatpush3.bf16.msra.mxu1 %v422_v61 }
 0x123   :  { %1148 = vmatprep.subr.bf16.mxu1 %v429_v63 }
 0x126   :  { %1149 = vmatpush3.bf16.msra.mxu1 %v421_v0 }
 0x127   :  { %1150 = vmatprep.subr.bf16.mxu1 %v428_v1 }
 0x12a   :  { %1151 = vmatpush3.bf16.msra.mxu1 %v420_v2 }
 0x12b   :  { %1152 = vmatprep.subr.bf16.mxu1 %v427_v3  ;;  %v987_v3 = vld [vmem:[%s1726_s4 + $0x8] sm:$0xff] }
 0x12c   :  { %1052 = vmatprep.mubr.f32.mxu0 %v987_v3 }
 0x12e   :  { %1153 = vmatpush3.bf16.msra.mxu1 %v419_v4 }
 0x12f   :  { %1154 = vmatprep.subr.bf16.mxu1 %v426_v5 }
 0x132   :  { %1155 = vmatpush3.bf16.msra.mxu1 %v418_v34  ;;  %v1404_v34 = vld [vmem:[%s1725_s2 + $0xd4] ss:$8 sps:$4 sm:$0xff]  }
 0x133   :  { %1156 = vmatprep.subr.bf16.mxu1 %v425_v6 }
 0x136   :  { %1157 = vmatpush3.bf16.msra.mxu1 %v417_v36  ;;  %v1407_v36 = vld [vmem:[%s1725_s2 + $0xe4] ss:$8 sps:$4 sm:$0xff]  }
 0x137   :  { %1158 = vmatprep.subr.bf16.mxu1 %v424_v7 }
 0x13a   :  { %1159 = vmatpush3.bf16.msra.mxu1 %v416_v28  ;;  %v1395_v28 = vld [vmem:[%s1725_s2 + $0xa4] ss:$8 sps:$4 sm:$0xff]  }
 0x13b   :  { %1160 = vmatprep.subr.bf16.mxu1 %v423_v8 }
 0x13e   :  { %1161 = vmatpush3.bf16.msra.mxu1 %v415_v30  ;;  %v1398_v30 = vld [vmem:[%s1725_s2 + $0xb4] ss:$8 sps:$4 sm:$0xff]  }
 0x141   :  { %688 = vmatmul.mubr.bf16.vlgmr.msra.gmra.mxu1 %v1365_v9 }
 0x142   :  { %695 = vmatprep.mubr.bf16.mxu1 %v1368_v10 }
 0x149   :  { %696 = vmatmul.mubr.bf16.gmra.mxu1 %v1370_v11 }
 0x14a   :  { %703 = vmatprep.mubr.bf16.mxu1 %v1371_v12 }
 0x151   :  { %704 = vmatmul.mubr.bf16.gmra.mxu1 %v1373_v13 }
 0x152   :  { %711 = vmatprep.mubr.bf16.mxu1 %v1374_v14 }
 0x159   :  { %712 = vmatmul.mubr.bf16.gmra.mxu1 %v1376_v15 }
 0x15a   :  { %719 = vmatprep.mubr.bf16.mxu1 %v1377_v16 }
 0x161   :  { %720 = vmatmul.mubr.bf16.gmra.mxu1 %v1379_v17 }
 0x162   :  { %727 = vmatprep.mubr.bf16.mxu1 %v1380_v18 }
 0x169   :  { %728 = vmatmul.mubr.bf16.gmra.mxu1 %v1382_v19 }
 0x16a   :  { %735 = vmatprep.mubr.bf16.mxu1 %v1383_v20 }
 0x171   :  { %736 = vmatmul.mubr.bf16.gmra.mxu1 %v1385_v21 }
 0x172   :  { %743 = vmatprep.mubr.bf16.mxu1 %v1386_v22 }
 0x179   :  { %744 = vmatmul.mubr.bf16.gmra.mxu1 %v1388_v23 }
 0x17a   :  { %751 = vmatprep.mubr.bf16.mxu1 %v1389_v24 }
 0x181   :  { %752 = vmatmul.mubr.bf16.gmra.mxu1 %v1391_v25 }
 0x182   :  { %759 = vmatprep.mubr.bf16.mxu1 %v1392_v26 }
 0x189   :  { %760 = vmatmul.mubr.bf16.gmra.mxu1 %v1394_v27 }
 0x18a   :  { %767 = vmatprep.mubr.bf16.mxu1 %v1395_v28 }
 0x191   :  { %768 = vmatmul.mubr.bf16.gmra.mxu1 %v1397_v29 }
 0x192   :  { %775 = vmatprep.mubr.bf16.mxu1 %v1398_v30 }
 0x199   :  { %776 = vmatmul.mubr.bf16.gmra.mxu1 %v1400_v31 }
 0x19a   :  { %783 = vmatprep.mubr.bf16.mxu1 %v1401_v32 }
 0x1a1   :  { %784 = vmatmul.mubr.bf16.gmra.mxu1 %v1403_v33 }
 0x1a2   :  { %791 = vmatprep.mubr.bf16.mxu1 %v1404_v34 }
 0x1a9   :  { %792 = vmatmul.mubr.bf16.gmra.mxu1 %v1406_v35 }
 0x1aa   :  { %799 = vmatprep.mubr.bf16.mxu1 %v1407_v36 }
 0x1b1   :  { %800 = vmatmul.mubr.bf16.gmra.mxu1 %v1409_v37 }
 0x1b2   :  { %807 = vmatprep.mubr.bf16.mxu1 %v1410_v38 }
 0x1b9   :  { %808 = vmatmul.mubr.bf16.gmra.mxu1 %v1412_v39 }
 0x201   :  { %v1162_v40 = vpop.f32.mrf.mxu1 }
 0x203   :  { %v1163_v41 = vpop.f32.mrf.mxu1 }
 0x204   :  { %v1614_v42 = vadd.f32 %v1163_v41, %v1162_v40 }
 0x205   :  { %v1165_v43 = vpop.f32.mrf.mxu1 }
 0x207   :  { %v1166_v44 = vpop.f32.mrf.mxu1 }
 0x208   :  { %v1616_v45 = vadd.f32 %v1166_v44, %v1165_v43 }
 0x209   :  { %v1168_v46 = vpop.f32.mrf.mxu1 }
 0x20b   :  { %v1169_v47 = vpop.f32.mrf.mxu1 }
 0x20c   :  { %v1618_v48 = vadd.f32 %v1169_v47, %v1168_v46 }
 0x20d   :  { %v1171_v49 = vpop.f32.mrf.mxu1 }
 0x20f   :  { %v1172_v50 = vpop.f32.mrf.mxu1 }
 0x210   :  { %v1620_v51 = vadd.f32 %v1172_v50, %v1171_v49 }
 0x211   :  { %v1174_v52 = vpop.f32.mrf.mxu1 }
 0x213   :  { %v1175_v53 = vpop.f32.mrf.mxu1 }
 0x214   :  { %v1622_v54 = vadd.f32 %v1175_v53, %v1174_v52 }
 0x215   :  { %v1177_v55 = vpop.f32.mrf.mxu1 }
 0x217   :  { %v1178_v56 = vpop.f32.mrf.mxu1 }
 0x218   :  { %v1624_v57 = vadd.f32 %v1178_v56, %v1177_v55 }
 0x219   :  { %v1180_v58 = vpop.f32.mrf.mxu1 }
 0x21b   :  { %v1181_v59 = vpop.f32.mrf.mxu1 }
 0x21c   :  { %v1626_v60 = vadd.f32 %v1181_v59, %v1180_v58 }
 0x21d   :  { %v1183_v61 = vpop.f32.mrf.mxu1 }
 0x21f   :  { %v1184_v62 = vpop.f32.mrf.mxu1 }
 0x220   :  { %v1628_v63 = vadd.f32 %v1184_v62, %v1183_v61 }
 0x221   :  { %v1186_v0 = vpop.f32.mrf.mxu1 }
 0x223   :  { %v1187_v1 = vpop.f32.mrf.mxu1 }
 0x224   :  { %v1630_v2 = vadd.f32 %v1187_v1, %v1186_v0 }
 0x225   :  { %v1189_v4 = vpop.f32.mrf.mxu1 }
 0x227   :  { %v1190_v5 = vpop.f32.mrf.mxu1 }
 0x228   :  { %v1635_v6 = vadd.f32 %v1190_v5, %v1189_v4 }
 0x229   :  { %v1192_v7 = vpop.f32.mrf.mxu1 }
 0x22b   :  { %v1193_v8 = vpop.f32.mrf.mxu1 }
 0x22c   :  { %v1637_v9 = vadd.f32 %v1193_v8, %v1192_v7 }
 0x22d   :  { %v1195_v10 = vpop.f32.mrf.mxu1 }
 0x22f   :  { %v1196_v11 = vpop.f32.mrf.mxu1 }
 0x230   :  { %v1639_v12 = vadd.f32 %v1196_v11, %v1195_v10  ;;  %v1662_v10 = vld [vmem:[%s1727_s3] ss:$0 sm:$0xff] }
 0x231   :  { %v1198_v13 = vpop.f32.mrf.mxu1 }
 0x233   :  { %v1199_v14 = vpop.f32.mrf.mxu1 }
 0x234   :  { %v1641_v15 = vadd.f32 %v1199_v14, %v1198_v13 }
 0x235   :  { %v1201_v16 = vpop.f32.mrf.mxu1 }
 0x237   :  { %v1202_v17 = vpop.f32.mrf.mxu1 }
 0x238   :  { %v1203_v18 = vadd.f32 %v1202_v17, %v1201_v16 }
 0x239   :  { %v1204_v19 = vpop.f32.mrf.mxu1 }
 0x23b   :  { %v1205_v20 = vpop.f32.mrf.mxu1 }
 0x23c   :  { %v1206_v21 = vadd.f32 %v1205_v20, %v1204_v19 }
 0x23d   :  { %v1207_v22 = vpop.f32.mrf.mxu1 }
 0x23e   :  { %v936_v20 = vadd.f32 %v1206_v21, %v1662_v10 }
 0x23f   :  { %v1208_v23 = vpop.f32.mrf.mxu1 }
 0x240   :  { %v1209_v24 = vadd.f32 %v1208_v23, %v1207_v22 }
 0x241   :  { %v1210_v25 = vpop.f32.mrf.mxu1 }
 0x242   :  { %v937_v14 = vadd.f32 %v1209_v24, %v1662_v10  ;;  %v934_v24 = vadd.f32 %v1641_v15, %v1662_v10  ;;  %v932_v15 = vadd.f32 %v1637_v9, %v1662_v10  ;;  %v930_v9 = vadd.f32 %v1630_v2, %v1662_v10 }
 0x243   :  { %v1211_v26 = vpop.f32.mrf.mxu1  ;;  %v928_v2 = vadd.f32 %v1626_v60, %v1662_v10 }
 0x244   :  { %v1643_v27 = vadd.f32 %v1211_v26, %v1210_v25  ;;  %v935_v26 = vadd.f32 %v1203_v18, %v1662_v10 }
 0x245   :  { %v1213_v28 = vpop.f32.mrf.mxu1  ;;  %v960_v60 = vmax.f32 %v928_v2, 0.0 }
 0x246   :  { %v967_v18 = vmax.f32 %v935_v26, 0.0 }
 0x247   :  { %v1214_v29 = vpop.f32.mrf.mxu1 }
 0x248   :  { %v1645_v30 = vadd.f32 %v1214_v29, %v1213_v28  ;;  %v969_v28 = vmax.f32 %v937_v14, 0.0 }
 0x249   :  { %v1216_v31 = vpop.f32.mrf.mxu1 }
 0x24b   :  { %v1217_v32 = vpop.f32.mrf.mxu1 }
 0x24c   :  { %v1647_v33 = vadd.f32 %v1217_v32, %v1216_v31 }
 0x24d   :  { %v1219_v34 = vpop.f32.mrf.mxu1 }
 0x24f   :  { %v1220_v35 = vpop.f32.mrf.mxu1 }
 0x250   :  { %v1649_v36 = vadd.f32 %v1220_v35, %v1219_v34  ;;  %v968_v34 = vmax.f32 %v936_v20, 0.0 }
 0x251   :  { %v1222_v37 = vpop.f32.mrf.mxu1 }
 0x252   :  { %v941_v14 = vadd.f32 %v1649_v36, %v1662_v10  ;;  %v939_v36 = vadd.f32 %v1645_v30, %v1662_v10 }
 0x253   :  { %v1223_v38 = vpop.f32.mrf.mxu1 }
 0x254   :  { %v1651_v39 = vadd.f32 %v1223_v38, %v1222_v37  ;;  %v933_v38 = vadd.f32 %v1639_v12, %v1662_v10  ;;  %v931_v12 = vadd.f32 %v1635_v6, %v1662_v10  ;;  %v929_v6 = vadd.f32 %v1628_v63, %v1662_v10 }
 0x255   :  { %v1653_v40 = vpop.f32.mrf.mxu1 }
 0x256   :  { %v942_v63 = vadd.f32 %v1651_v39, %v1662_v10  ;;  %v940_v39 = vadd.f32 %v1647_v33, %v1662_v10  ;;  %v938_v33 = vadd.f32 %v1643_v27, %v1662_v10 }
 0x257   :  { %v1655_v41 = vpop.f32.mrf.mxu1 }
 0x259   :  { %v1657_v43 = vpop.f32.mrf.mxu1 }
 0x25b   :  { %v1229_v44 = vpop.f32.mrf.mxu1 }
 0x25d   :  { %v1231_v46 = vpop.f32.mrf.mxu1 }
 0x25f   :  { %v1232_v47 = vpop.f32.mrf.mxu1 }
 0x261   :  { %v1234_v49 = vpop.f32.mrf.mxu1 }
 0x263   :  { %v1235_v50 = vpop.f32.mrf.mxu1 }
 0x265   :  { %v1237_v52 = vpop.f32.mrf.mxu1 }
 0x267   :  { %v1238_v53 = vpop.f32.mrf.mxu1 }
 0x268   :  { %v1239_v35 = vadd.f32 %v1238_v53, %v1237_v52  ;;  %v1233_v52 = vadd.f32 %v1232_v47, %v1231_v46  ;;  %v1227_v46 = vadd.f32 %v1655_v41, %v1653_v40 }
 0x269   :  { %v1240_v55 = vpop.f32.mrf.mxu1 }
 0x26a   :  { %v947_v53 = vadd.f32 %v1239_v35, %v1662_v10  ;;  %v945_v47 = vadd.f32 %v1233_v52, %v1662_v10  ;;  %v943_v40 = vadd.f32 %v1227_v46, %v1662_v10 }
 0x26b   :  { %v1241_v56 = vpop.f32.mrf.mxu1 }
 0x26c   :  { %v1242_v29 = vadd.f32 %v1241_v56, %v1240_v55  ;;  %v1236_v55 = vadd.f32 %v1235_v50, %v1234_v49  ;;  %v1230_v49 = vadd.f32 %v1229_v44, %v1657_v43  ;;  %v963_v43 = vmax.f32 %v931_v12, 0.0 }
 0x26d   :  { %v1243_v58 = vpop.f32.mrf.mxu1  ;;  %v977_v41 = vmax.f32 %v945_v47, 0.0 }
 0x26e   :  { %v948_v56 = vadd.f32 %v1242_v29, %v1662_v10  ;;  %v946_v50 = vadd.f32 %v1236_v55, %v1662_v10  ;;  %v944_v44 = vadd.f32 %v1230_v49, %v1662_v10  ;;  %v970_v29 = vmax.f32 %v938_v33, 0.0 }
 0x26f   :  { %v1244_v59 = vpop.f32.mrf.mxu1 }
 0x270   :  { %v1245_v22 = vadd.f32 %v1244_v59, %v1243_v58  ;;  %v966_v59 = vmax.f32 %v934_v24, 0.0 }
 0x271   :  { %v1246_v61 = vpop.f32.mrf.mxu1 }
 0x272   :  { %v949_v21 = vadd.f32 %v1245_v22, %v1662_v10  ;;  %v973_v22 = vmax.f32 %v941_v14, 0.0 }
 0x273   :  { %v1247_v62 = vpop.f32.mrf.mxu1 }
 0x274   :  { %v1248_v16 = vadd.f32 %v1247_v62, %v1246_v61  ;;  %v981_v61 = vmax.f32 %v949_v21, 0.0  ;;  %v965_v62 = vmax.f32 %v933_v38, 0.0 }
 0x275   :  { %v1249_v0 = vpop.f32.mrf.mxu1 }
 0x276   :  { %v950_v31 = vadd.f32 %v1248_v16, %v1662_v10  ;;  %v975_v16 = vmax.f32 %v943_v40, 0.0 }
 0x277   :  { %v1250_v1 = vpop.f32.mrf.mxu1 }
 0x278   :  { %v1251_v11 = vadd.f32 %v1250_v1, %v1249_v0  ;;  %v982_v58 = vmax.f32 %v950_v31, 0.0  ;;  %v980_v0 = vmax.f32 %v948_v56, 0.0  ;;  %v964_v1 = vmax.f32 %v932_v15, 0.0 }
 0x279   :  { %v1252_v3 = vpop.f32.mrf.mxu1 }
 0x27a   :  { %v951_v23 = vadd.f32 %v1251_v11, %v1662_v10  ;;  %v976_v11 = vmax.f32 %v944_v44, 0.0 }
 0x27b   :  { %v1253_v4 = vpop.f32.mrf.mxu1 }
 0x27c   :  { %v1254_v7 = vadd.f32 %v1253_v4, %v1252_v3  ;;  %v983_v37 = vmax.f32 %v951_v23, 0.0  ;;  %v979_v3 = vmax.f32 %v947_v53, 0.0  ;;  %v978_v4 = vmax.f32 %v946_v50, 0.0 }
 0x27d   :  { %v1255_v5 = vpop.f32.mrf.mxu1 }
 0x27e   :  { %v952_v17 = vadd.f32 %v1254_v7, %v1662_v10  ;;  %v927_v7 = vadd.f32 %v1624_v57, %v1662_v10  ;;  %v925_v57 = vadd.f32 %v1620_v51, %v1662_v10  ;;  %v923_v51 = vadd.f32 %v1616_v45, %v1662_v10  ;;  %v986_v45 = vld [vmem:[%s1726_s4] sm:$0xff] }
 0x27f   :  { %v1256_v8 = vpop.f32.mrf.mxu1 }
 0x280   :  { %v1257_v13 = vadd.f32 %v1256_v8, %v1255_v5  ;;  %v984_v32 = vmax.f32 %v952_v17, 0.0  ;;  %v962_v5 = vmax.f32 %v930_v9, 0.0  ;;  %v961_v8 = vmax.f32 %v929_v6, 0.0 }
 0x281   :  { %v959_v17 = vmax.f32 %v927_v7, 0.0  ;;  %v957_v23 = vmax.f32 %v925_v57, 0.0  ;;  %v955_v30 = vmax.f32 %v923_v51, 0.0 }
 0x282   :  { %v953_v19 = vadd.f32 %v1257_v13, %v1662_v10  ;;  %v926_v13 = vadd.f32 %v1622_v54, %v1662_v10  ;;  %v924_v54 = vadd.f32 %v1618_v48, %v1662_v10  ;;  %v922_v48 = vadd.f32 %v1614_v42, %v1662_v10 }
 0x284   :  { %v985_v25 = vmax.f32 %v953_v19, 0.0  ;;  %v974_v19 = vmax.f32 %v942_v63, 0.0  ;;  %v958_v20 = vmax.f32 %v926_v13, 0.0  ;;  %v956_v26 = vmax.f32 %v924_v54, 0.0 }
 0x285   :  { %v954_v31 = vmax.f32 %v922_v48, 0.0 }
 0x286   :  { %1258 = vmatprep.subr.mxu0 %v985_v25  ;;  %v972_v25 = vmax.f32 %v940_v39, 0.0 }
 0x287   :  { %1259 = vmatpush3.msra.mxu0 %v969_v28  ;;  %v971_v28 = vmax.f32 %v939_v36, 0.0 }
 0x288   :  { %1260 = vmatprep.subr.mxu0 %v984_v32 }
 0x289   :  { %1261 = vmatpush3.msra.mxu0 %v968_v34 }
 0x28a   :  { %1262 = vmatprep.subr.mxu0 %v983_v37 }
 0x28b   :  { %1263 = vmatpush3.msra.mxu0 %v967_v18 }
 0x28c   :  { %1264 = vmatprep.subr.mxu0 %v982_v58 }
 0x28d   :  { %1265 = vmatpush3.msra.mxu0 %v966_v59 }
 0x28e   :  { %1266 = vmatprep.subr.mxu0 %v981_v61 }
 0x28f   :  { %1267 = vmatpush3.msra.mxu0 %v965_v62 }
 0x290   :  { %1268 = vmatprep.subr.mxu0 %v980_v0 }
 0x291   :  { %1269 = vmatpush3.msra.mxu0 %v964_v1 }
 0x292   :  { %1270 = vmatprep.subr.mxu0 %v979_v3 }
 0x293   :  { %1271 = vmatpush3.msra.mxu0 %v963_v43 }
 0x294   :  { %1272 = vmatprep.subr.mxu0 %v978_v4 }
 0x295   :  { %1273 = vmatpush3.msra.mxu0 %v962_v5 }
 0x296   :  { %1274 = vmatprep.subr.mxu0 %v977_v41 }
 0x297   :  { %1275 = vmatpush3.msra.mxu0 %v961_v8 }
 0x298   :  { %1276 = vmatprep.subr.mxu0 %v976_v11 }
 0x299   :  { %1277 = vmatpush3.msra.mxu0 %v960_v60 }
 0x29a   :  { %1278 = vmatprep.subr.mxu0 %v975_v16 }
 0x29b   :  { %1279 = vmatpush3.msra.mxu0 %v959_v17 }
 0x29c   :  { %1280 = vmatprep.subr.mxu0 %v974_v19 }
 0x29d   :  { %1281 = vmatpush3.msra.mxu0 %v958_v20 }
 0x29e   :  { %1282 = vmatprep.subr.mxu0 %v973_v22 }
 0x29f   :  { %1283 = vmatpush3.msra.mxu0 %v957_v23 }
 0x2a0   :  { %1284 = vmatprep.subr.mxu0 %v972_v25 }
 0x2a1   :  { %1285 = vmatpush3.msra.mxu0 %v956_v26 }
 0x2a2   :  { %1286 = vmatprep.subr.mxu0 %v971_v28 }
 0x2a3   :  { %1287 = vmatpush3.msra.mxu0 %v955_v30 }
 0x2a4   :  { %1288 = vmatprep.subr.mxu0 %v970_v29 }
 0x2a5   :  { %1289 = vmatpush3.msra.mxu0 %v954_v31 }
 0x2a6   :  { %1053 = vmatmul.mubr.f32.vlgmr.msra.gmra.mxu0 %v986_v45 }
 0x366   :  { %v1290_v27 = vpop.f32.mrf.mxu0 }
 0x368   :  { %v1291_v32 = vpop.f32.mrf.mxu0 }
 0x369   :  { %v1292_v42 = vadd.f32 %v1291_v32, %v1290_v27 }
 0x36b   :  { %1058 = vst [vmem:[%s1728_s5] sm:$0xff] %v1292_v42 }

// kernel: gcn_forward.3
= control target key start
LH: loop header
LB: loop body
LE: loop exit
PB: predicated region body
PF: predicated region fallthrough
CT: control target
= control target key end

     0   :  { %s1923_s1 = inlined_call_operand.vmem [shape: bf16[128,128], index: 1, kind: input, shape index: {}]   ;;  %s1924_s0 = inlined_call_operand.vmem [shape: bf16[256,128], index: 0, kind: input, shape index: {}]   ;;  %s1925_s2 = inlined_call_operand.vmem [shape: bf16[256,256], index: 2, kind: input, shape index: {}]   ;;  %s1926_s3 = inlined_call_operand.vmem [shape: f32[1,128], index: 3, kind: input, shape index: {}]   ;;  %s1927_s4 = inlined_call_operand.vmem [shape: bf16[256,128], index: 4, kind: output, shape index: {}]  }
   0x1   :  { %v1565_v0 = vld [vmem:[%s1923_s1 + $0x38] sm:$0xff]   ;;  %v1566_v1 = vld [vmem:[%s1923_s1 + $0x30] sm:$0xff]   ;;  %v1567_v2 = vld [vmem:[%s1923_s1 + $0x28] sm:$0xff]  }
   0x2   :  { %1501 = vmatprep.subr.bf16.mxu0 %v1565_v0  ;;  %v1568_v3 = vld [vmem:[%s1923_s1 + $0x20] sm:$0xff]   ;;  %v1569_v5 = vld [vmem:[%s1923_s1 + $0x18] sm:$0xff]   ;;  %v1570_v6 = vld [vmem:[%s1923_s1 + $0x10] sm:$0xff]  }
   0x3   :  { %1502 = vmatpush3.bf16.msra.mxu0 %v1565_v0  ;;  %v1573_v4 = vld [vmem:[%s1924_s0] sm:$0xff]   ;;  %v1571_v7 = vld [vmem:[%s1923_s1 + $0x8] sm:$0xff]   ;;  %v1575_v10 = vld [vmem:[%s1924_s0 + $0x10] sm:$0xff]  }
   0x4   :  { %1503 = vmatprep.subr.bf16.mxu0 %v1566_v1  ;;  %1517 = vmatprep.mubr.bf16.mxu0 %v1573_v4  ;;  %v1572_v8 = vld [vmem:[%s1923_s1] sm:$0xff]   ;;  %v1574_v9 = vld [vmem:[%s1924_s0 + $0x8] sm:$0xff]   ;;  %v1576_v11 = vld [vmem:[%s1924_s0 + $0x18] sm:$0xff]  }
   0x5   :  { %v1577_v12 = vld [vmem:[%s1924_s0 + $0x20] sm:$0xff]   ;;  %v1578_v13 = vld [vmem:[%s1924_s0 + $0x28] sm:$0xff]   ;;  %v1579_v14 = vld [vmem:[%s1924_s0 + $0x30] sm:$0xff]  }
   0x6   :  { %v1580_v15 = vld [vmem:[%s1924_s0 + $0x38] sm:$0xff]   ;;  %v1581_v16 = vld [vmem:[%s1924_s0 + $0x40] sm:$0xff]   ;;  %v1582_v17 = vld [vmem:[%s1924_s0 + $0x48] sm:$0xff]  }
   0x7   :  { %1504 = vmatpush3.bf16.msra.mxu0 %v1566_v1  ;;  %v1583_v18 = vld [vmem:[%s1924_s0 + $0x50] sm:$0xff]   ;;  %v1584_v19 = vld [vmem:[%s1924_s0 + $0x58] sm:$0xff]   ;;  %v1585_v20 = vld [vmem:[%s1924_s0 + $0x60] sm:$0xff]  }
   0x8   :  { %1505 = vmatprep.subr.bf16.mxu0 %v1567_v2  ;;  %v1586_v21 = vld [vmem:[%s1924_s0 + $0x68] sm:$0xff]   ;;  %v1587_v22 = vld [vmem:[%s1924_s0 + $0x70] sm:$0xff]   ;;  %v1588_v23 = vld [vmem:[%s1924_s0 + $0x78] sm:$0xff]  }
   0x9   :  { %v1591_v24 = vld [vmem:[%s1925_s2 + $0x44] ss:$8 sps:$4 sm:$0xff]  }
   0xa   :  { %716 = vmatprep.mubr.bf16.mxu1 %v1591_v24  ;;  %v1615_v41 = vld [vmem:[%s1925_s2 + $0x4] ss:$8 sps:$4 sm:$0xff]  }
   0xb   :  { %1506 = vmatpush3.bf16.msra.mxu0 %v1567_v2  ;;  %v1601_v24 = vld [vmem:[%s1925_s2 + $0x84] ss:$8 sps:$4 sm:$0xff]  }
   0xc   :  { %1507 = vmatprep.subr.bf16.mxu0 %v1568_v3 }
   0xf   :  { %1508 = vmatpush3.bf16.msra.mxu0 %v1568_v3 }
  0x10   :  { %1509 = vmatprep.subr.bf16.mxu0 %v1569_v5 }
  0x13   :  { %1510 = vmatpush3.bf16.msra.mxu0 %v1569_v5 }
  0x14   :  { %1511 = vmatprep.subr.bf16.mxu0 %v1570_v6 }
  0x17   :  { %1512 = vmatpush3.bf16.msra.mxu0 %v1570_v6 }
  0x18   :  { %1513 = vmatprep.subr.bf16.mxu0 %v1571_v7 }
  0x1b   :  { %1514 = vmatpush3.bf16.msra.mxu0 %v1571_v7 }
  0x1c   :  { %1515 = vmatprep.subr.bf16.mxu0 %v1572_v8 }
  0x1f   :  { %1516 = vmatpush3.bf16.msra.mxu0 %v1572_v8 }
  0x22   :  { %1518 = vmatmul.mubr.bf16.vlgmr.msra.gmra.mxu0 %v1574_v9 }
  0x23   :  { %1521 = vmatprep.mubr.bf16.mxu0 %v1575_v10  ;;  %v1589_v10 = vld [vmem:[%s1925_s2 + $0x40] ss:$8 sps:$4 sm:$0xff]  }
  0x2a   :  { %1522 = vmatmul.mubr.bf16.gmra.mxu0 %v1576_v11  ;;  %v1613_v11 = vld [vmem:[%s1925_s2] ss:$8 sps:$4 sm:$0xff]  }
  0x2b   :  { %1525 = vmatprep.mubr.bf16.mxu0 %v1577_v12  ;;  %v1592_v12 = vld [vmem:[%s1925_s2 + $0x54] ss:$8 sps:$4 sm:$0xff]  }
  0x32   :  { %1526 = vmatmul.mubr.bf16.gmra.mxu0 %v1578_v13  ;;  %v1619_v13 = vld [vmem:[%s1925_s2 + $0x14] ss:$8 sps:$4 sm:$0xff]  }
  0x33   :  { %1529 = vmatprep.mubr.bf16.mxu0 %v1579_v14  ;;  %v1594_v14 = vld [vmem:[%s1925_s2 + $0x50] ss:$8 sps:$4 sm:$0xff]  }
  0x3a   :  { %1530 = vmatmul.mubr.bf16.gmra.mxu0 %v1580_v15  ;;  %v1621_v15 = vld [vmem:[%s1925_s2 + $0x10] ss:$8 sps:$4 sm:$0xff]  }
  0x3b   :  { %1533 = vmatprep.mubr.bf16.mxu0 %v1581_v16  ;;  %v1595_v16 = vld [vmem:[%s1925_s2 + $0x64] ss:$8 sps:$4 sm:$0xff]  }
  0x42   :  { %1534 = vmatmul.mubr.bf16.gmra.mxu0 %v1582_v17  ;;  %v1625_v17 = vld [vmem:[%s1925_s2 + $0x24] ss:$8 sps:$4 sm:$0xff]  }
  0x43   :  { %1537 = vmatprep.mubr.bf16.mxu0 %v1583_v18  ;;  %v1597_v18 = vld [vmem:[%s1925_s2 + $0x60] ss:$8 sps:$4 sm:$0xff]  }
  0x4a   :  { %1538 = vmatmul.mubr.bf16.gmra.mxu0 %v1584_v19  ;;  %v1627_v19 = vld [vmem:[%s1925_s2 + $0x20] ss:$8 sps:$4 sm:$0xff]  }
  0x4b   :  { %1541 = vmatprep.mubr.bf16.mxu0 %v1585_v20  ;;  %v1598_v20 = vld [vmem:[%s1925_s2 + $0x74] ss:$8 sps:$4 sm:$0xff]  }
  0x52   :  { %1542 = vmatmul.mubr.bf16.gmra.mxu0 %v1586_v21  ;;  %v1631_v21 = vld [vmem:[%s1925_s2 + $0x34] ss:$8 sps:$4 sm:$0xff]  }
  0x53   :  { %1545 = vmatprep.mubr.bf16.mxu0 %v1587_v22  ;;  %v1600_v22 = vld [vmem:[%s1925_s2 + $0x70] ss:$8 sps:$4 sm:$0xff]  }
  0x5a   :  { %1546 = vmatmul.mubr.bf16.gmra.mxu0 %v1588_v23  ;;  %v1633_v23 = vld [vmem:[%s1925_s2 + $0x30] ss:$8 sps:$4 sm:$0xff]  }
  0x5b   :  { %684 = vmatprep.mubr.bf16.mxu0 %v1615_v41 }
  0xe2   :  { %v1519_v25 = vpop.f32.mrf.mxu0 }
  0xe4   :  { %v285_v26 = vpop.f32.mrf.mxu0 }
  0xe6   :  { %v1520_v27 = vpop.f32.mrf.mxu0 }
  0xe7   :  { %v1737_v28 = vpack.c.bf16 %v1520_v27, %v1519_v25  ;;  %v1603_v25 = vld [vmem:[%s1925_s2 + $0x80] ss:$8 sps:$4 sm:$0xff]   ;;  %v1606_v27 = vld [vmem:[%s1925_s2 + $0x90] ss:$8 sps:$4 sm:$0xff]  }
  0xe8   :  { %v288_v29 = vpop.f32.mrf.mxu0 }
  0xe9   :  { %v1739_v30 = vpack.c.bf16 %v288_v29, %v285_v26  ;;  %v1604_v26 = vld [vmem:[%s1925_s2 + $0x94] ss:$8 sps:$4 sm:$0xff]   ;;  %v1609_v29 = vld [vmem:[%s1925_s2 + $0xa0] ss:$8 sps:$4 sm:$0xff]  }
  0xea   :  { %v1523_v31 = vpop.f32.mrf.mxu0 }
  0xec   :  { %v301_v32 = vpop.f32.mrf.mxu0 }
  0xee   :  { %v1524_v33 = vpop.f32.mrf.mxu0 }
  0xef   :  { %v415_v34 = vpack.c.bf16 %v1524_v33, %v1523_v31  ;;  %v1612_v31 = vld [vmem:[%s1925_s2 + $0xb0] ss:$8 sps:$4 sm:$0xff]   ;;  %v1618_v33 = vld [vmem:[%s1925_s2 + $0xc0] ss:$8 sps:$4 sm:$0xff]  }
  0xf0   :  { %v304_v35 = vpop.f32.mrf.mxu0 }
  0xf1   :  { %v414_v36 = vpack.c.bf16 %v304_v35, %v301_v32  ;;  %v1616_v32 = vld [vmem:[%s1925_s2 + $0xc4] ss:$8 sps:$4 sm:$0xff]   ;;  %v1624_v35 = vld [vmem:[%s1925_s2 + $0xd0] ss:$8 sps:$4 sm:$0xff]  }
  0xf2   :  { %v1527_v37 = vpop.f32.mrf.mxu0 }
  0xf4   :  { %v317_v38 = vpop.f32.mrf.mxu0 }
  0xf6   :  { %v1528_v39 = vpop.f32.mrf.mxu0 }
  0xf7   :  { %v417_v3 = vpack.c.bf16 %v1528_v39, %v1527_v37  ;;  %v1630_v37 = vld [vmem:[%s1925_s2 + $0xe0] ss:$8 sps:$4 sm:$0xff]   ;;  %v1636_v39 = vld [vmem:[%s1925_s2 + $0xf0] ss:$8 sps:$4 sm:$0xff]  }
  0xf8   :  { %v320_v40 = vpop.f32.mrf.mxu0 }
  0xf9   :  { %v416_v5 = vpack.c.bf16 %v320_v40, %v317_v38  ;;  %v1634_v38 = vld [vmem:[%s1925_s2 + $0xf4] ss:$8 sps:$4 sm:$0xff]  }
  0xfa   :  { %v1531_v42 = vpop.f32.mrf.mxu0 }
  0xfc   :  { %v333_v43 = vpop.f32.mrf.mxu0 }
  0xfe   :  { %v1532_v44 = vpop.f32.mrf.mxu0 }
  0xff   :  { %v419_v62 = vpack.c.bf16 %v1532_v44, %v1531_v42 }
 0x100   :  { %v336_v45 = vpop.f32.mrf.mxu0 }
 0x101   :  { %v418_v1 = vpack.c.bf16 %v336_v45, %v333_v43  ;;  %v1841_v45 = vld [vmem:[%s1926_s3] ss:$0 sm:$0xff] }
 0x102   :  { %v1535_v46 = vpop.f32.mrf.mxu0 }
 0x104   :  { %v349_v47 = vpop.f32.mrf.mxu0 }
 0x106   :  { %v1536_v48 = vpop.f32.mrf.mxu0 }
 0x107   :  { %v421_v8 = vpack.c.bf16 %v1536_v48, %v1535_v46 }
 0x108   :  { %v352_v49 = vpop.f32.mrf.mxu0 }
 0x109   :  { %v420_v9 = vpack.c.bf16 %v352_v49, %v349_v47 }
 0x10a   :  { %v1539_v50 = vpop.f32.mrf.mxu0 }
 0x10c   :  { %v365_v51 = vpop.f32.mrf.mxu0 }
 0x10e   :  { %v1540_v52 = vpop.f32.mrf.mxu0 }
 0x10f   :  { %v423_v6 = vpack.c.bf16 %v1540_v52, %v1539_v50 }
 0x110   :  { %v368_v53 = vpop.f32.mrf.mxu0 }
 0x111   :  { %v422_v7 = vpack.c.bf16 %v368_v53, %v365_v51 }
 0x112   :  { %v1543_v54 = vpop.f32.mrf.mxu0 }
 0x114   :  { %v381_v55 = vpop.f32.mrf.mxu0 }
 0x116   :  { %v1544_v56 = vpop.f32.mrf.mxu0 }
 0x117   :  { %v425_v2 = vpack.c.bf16 %v1544_v56, %v1543_v54 }
 0x118   :  { %v384_v57 = vpop.f32.mrf.mxu0 }
 0x119   :  { %v424_v4 = vpack.c.bf16 %v384_v57, %v381_v55 }
 0x11a   :  { %v1547_v58 = vpop.f32.mrf.mxu0 }
 0x11c   :  { %v397_v59 = vpop.f32.mrf.mxu0 }
 0x11e   :  { %v1548_v60 = vpop.f32.mrf.mxu0 }
 0x11f   :  { %v427_v61 = vpack.c.bf16 %v1548_v60, %v1547_v58 }
 0x120   :  { %v400_v63 = vpop.f32.mrf.mxu0 }
 0x121   :  { %v426_v0 = vpack.c.bf16 %v400_v63, %v397_v59  ;;  %1389 = vmatprep.subr.bf16.mxu0 %v427_v61  ;;  %1549 = vmatprep.subr.bf16.mxu1 %v427_v61 }
 0x122   :  { %1390 = vmatpush3.bf16.msra.mxu0 %v419_v62  ;;  %1557 = vmatpush3.bf16.msra.mxu1 %v419_v62 }
 0x123   :  { %1391 = vmatprep.subr.bf16.mxu0 %v426_v0  ;;  %1550 = vmatprep.subr.bf16.mxu1 %v426_v0 }
 0x126   :  { %1392 = vmatpush3.bf16.msra.mxu0 %v418_v1  ;;  %1558 = vmatpush3.bf16.msra.mxu1 %v418_v1 }
 0x127   :  { %1393 = vmatprep.subr.bf16.mxu0 %v425_v2  ;;  %1551 = vmatprep.subr.bf16.mxu1 %v425_v2 }
 0x12a   :  { %1394 = vmatpush3.bf16.msra.mxu0 %v417_v3  ;;  %1559 = vmatpush3.bf16.msra.mxu1 %v417_v3 }
 0x12b   :  { %1395 = vmatprep.subr.bf16.mxu0 %v424_v4  ;;  %1552 = vmatprep.subr.bf16.mxu1 %v424_v4 }
 0x12e   :  { %1396 = vmatpush3.bf16.msra.mxu0 %v416_v5  ;;  %1560 = vmatpush3.bf16.msra.mxu1 %v416_v5 }
 0x12f   :  { %1397 = vmatprep.subr.bf16.mxu0 %v423_v6  ;;  %1553 = vmatprep.subr.bf16.mxu1 %v423_v6 }
 0x132   :  { %1398 = vmatpush3.bf16.msra.mxu0 %v415_v34  ;;  %1561 = vmatpush3.bf16.msra.mxu1 %v415_v34  ;;  %v1622_v34 = vld [vmem:[%s1925_s2 + $0xd4] ss:$8 sps:$4 sm:$0xff]  }
 0x133   :  { %1399 = vmatprep.subr.bf16.mxu0 %v422_v7  ;;  %1554 = vmatprep.subr.bf16.mxu1 %v422_v7 }
 0x136   :  { %1400 = vmatpush3.bf16.msra.mxu0 %v414_v36  ;;  %1562 = vmatpush3.bf16.msra.mxu1 %v414_v36  ;;  %v1628_v36 = vld [vmem:[%s1925_s2 + $0xe4] ss:$8 sps:$4 sm:$0xff]  }
 0x137   :  { %1401 = vmatprep.subr.bf16.mxu0 %v421_v8  ;;  %1555 = vmatprep.subr.bf16.mxu1 %v421_v8 }
 0x13a   :  { %1402 = vmatpush3.bf16.msra.mxu0 %v1737_v28  ;;  %1563 = vmatpush3.bf16.msra.mxu1 %v1737_v28  ;;  %v1607_v28 = vld [vmem:[%s1925_s2 + $0xa4] ss:$8 sps:$4 sm:$0xff]  }
 0x13b   :  { %1403 = vmatprep.subr.bf16.mxu0 %v420_v9  ;;  %1556 = vmatprep.subr.bf16.mxu1 %v420_v9 }
 0x13e   :  { %1404 = vmatpush3.bf16.msra.mxu0 %v1739_v30  ;;  %1564 = vmatpush3.bf16.msra.mxu1 %v1739_v30  ;;  %v1610_v30 = vld [vmem:[%s1925_s2 + $0xb4] ss:$8 sps:$4 sm:$0xff]  }
 0x141   :  { %717 = vmatmul.mubr.bf16.vlgmr.msra.gmra.mxu1 %v1589_v10  ;;  %685 = vmatmul.mubr.bf16.vlgmr.msra.gmra.mxu0 %v1613_v11 }
 0x142   :  { %724 = vmatprep.mubr.bf16.mxu1 %v1592_v12  ;;  %692 = vmatprep.mubr.bf16.mxu0 %v1619_v13 }
 0x149   :  { %725 = vmatmul.mubr.bf16.gmra.mxu1 %v1594_v14  ;;  %693 = vmatmul.mubr.bf16.gmra.mxu0 %v1621_v15 }
 0x14a   :  { %732 = vmatprep.mubr.bf16.mxu1 %v1595_v16  ;;  %700 = vmatprep.mubr.bf16.mxu0 %v1625_v17 }
 0x151   :  { %733 = vmatmul.mubr.bf16.gmra.mxu1 %v1597_v18  ;;  %701 = vmatmul.mubr.bf16.gmra.mxu0 %v1627_v19 }
 0x152   :  { %740 = vmatprep.mubr.bf16.mxu1 %v1598_v20  ;;  %708 = vmatprep.mubr.bf16.mxu0 %v1631_v21 }
 0x159   :  { %741 = vmatmul.mubr.bf16.gmra.mxu1 %v1600_v22  ;;  %709 = vmatmul.mubr.bf16.gmra.mxu0 %v1633_v23 }
 0x15a   :  { %748 = vmatprep.mubr.bf16.mxu1 %v1601_v24 }
 0x161   :  { %749 = vmatmul.mubr.bf16.gmra.mxu1 %v1603_v25 }
 0x162   :  { %756 = vmatprep.mubr.bf16.mxu1 %v1604_v26 }
 0x169   :  { %757 = vmatmul.mubr.bf16.gmra.mxu1 %v1606_v27 }
 0x16a   :  { %764 = vmatprep.mubr.bf16.mxu1 %v1607_v28 }
 0x171   :  { %765 = vmatmul.mubr.bf16.gmra.mxu1 %v1609_v29 }
 0x172   :  { %772 = vmatprep.mubr.bf16.mxu1 %v1610_v30 }
 0x179   :  { %773 = vmatmul.mubr.bf16.gmra.mxu1 %v1612_v31 }
 0x17a   :  { %780 = vmatprep.mubr.bf16.mxu1 %v1616_v32 }
 0x181   :  { %781 = vmatmul.mubr.bf16.gmra.mxu1 %v1618_v33 }
 0x182   :  { %788 = vmatprep.mubr.bf16.mxu1 %v1622_v34 }
 0x189   :  { %789 = vmatmul.mubr.bf16.gmra.mxu1 %v1624_v35 }
 0x18a   :  { %796 = vmatprep.mubr.bf16.mxu1 %v1628_v36 }
 0x191   :  { %797 = vmatmul.mubr.bf16.gmra.mxu1 %v1630_v37 }
 0x192   :  { %804 = vmatprep.mubr.bf16.mxu1 %v1634_v38 }
 0x199   :  { %805 = vmatmul.mubr.bf16.gmra.mxu1 %v1636_v39 }
 0x201   :  { %v1429_v40 = vpop.f32.mrf.mxu1  ;;  %v1405_v41 = vpop.f32.mrf.mxu0 }
 0x203   :  { %v1430_v42 = vpop.f32.mrf.mxu1  ;;  %v1406_v43 = vpop.f32.mrf.mxu0 }
 0x204   :  { %v1431_v44 = vadd.f32 %v1430_v42, %v1429_v40  ;;  %v1407_v46 = vadd.f32 %v1406_v43, %v1405_v41 }
 0x205   :  { %v1432_v47 = vpop.f32.mrf.mxu1  ;;  %v1408_v48 = vpop.f32.mrf.mxu0 }
 0x206   :  { %v919_v49 = vadd.f32 %v1407_v46, %v1841_v45  ;;  %v927_v50 = vadd.f32 %v1431_v44, %v1841_v45 }
 0x207   :  { %v1433_v51 = vpop.f32.mrf.mxu1  ;;  %v1409_v52 = vpop.f32.mrf.mxu0 }
 0x208   :  { %v1434_v53 = vadd.f32 %v1433_v51, %v1432_v47  ;;  %v1410_v54 = vadd.f32 %v1409_v52, %v1408_v48  ;;  %v951_v58 = vmax.f32 %v919_v49, 0.0  ;;  %v959_v60 = vmax.f32 %v927_v50, 0.0 }
 0x209   :  { %v1435_v55 = vpop.f32.mrf.mxu1  ;;  %v1411_v56 = vpop.f32.mrf.mxu0 }
 0x20a   :  { %v928_v57 = vadd.f32 %v1434_v53, %v1841_v45  ;;  %v920_v59 = vadd.f32 %v1410_v54, %v1841_v45 }
 0x20b   :  { %v1436_v61 = vpop.f32.mrf.mxu1  ;;  %v1412_v62 = vpop.f32.mrf.mxu0 }
 0x20c   :  { %v960_v63 = vmax.f32 %v928_v57, 0.0  ;;  %v1437_v0 = vadd.f32 %v1436_v61, %v1435_v55  ;;  %v952_v1 = vmax.f32 %v920_v59, 0.0  ;;  %v1413_v2 = vadd.f32 %v1412_v62, %v1411_v56 }
 0x20d   :  { %v1438_v3 = vpop.f32.mrf.mxu1  ;;  %v1414_v4 = vpop.f32.mrf.mxu0 }
 0x20e   :  { %v1293_v5 = vpack.c.bf16 %v960_v63, %v959_v60  ;;  %v1273_v6 = vpack.c.bf16 %v952_v1, %v951_v58  ;;  %v921_v7 = vadd.f32 %v1413_v2, %v1841_v45  ;;  %v929_v8 = vadd.f32 %v1437_v0, %v1841_v45 }
 0x20f   :  { %v1439_v9 = vpop.f32.mrf.mxu1  ;;  %v1415_v10 = vpop.f32.mrf.mxu0 }
 0x210   :  { %1353 = vst [vmem:[%s1927_s4 + $0x20] sm:$0xff] %v1293_v5   ;;  %v1440_v11 = vadd.f32 %v1439_v9, %v1438_v3  ;;  %1274 = vst [vmem:[%s1927_s4] sm:$0xff] %v1273_v6   ;;  %v1416_v12 = vadd.f32 %v1415_v10, %v1414_v4  ;;  %v953_v16 = vmax.f32 %v921_v7, 0.0  ;;  %v961_v18 = vmax.f32 %v929_v8, 0.0 }
 0x211   :  { %v1441_v13 = vpop.f32.mrf.mxu1  ;;  %v1417_v14 = vpop.f32.mrf.mxu0 }
 0x212   :  { %v930_v15 = vadd.f32 %v1440_v11, %v1841_v45  ;;  %v922_v17 = vadd.f32 %v1416_v12, %v1841_v45 }
 0x213   :  { %v1442_v19 = vpop.f32.mrf.mxu1  ;;  %v1418_v20 = vpop.f32.mrf.mxu0 }
 0x214   :  { %v962_v21 = vmax.f32 %v930_v15, 0.0  ;;  %v1443_v22 = vadd.f32 %v1442_v19, %v1441_v13  ;;  %v954_v23 = vmax.f32 %v922_v17, 0.0  ;;  %v1419_v24 = vadd.f32 %v1418_v20, %v1417_v14 }
 0x215   :  { %v1444_v25 = vpop.f32.mrf.mxu1  ;;  %v1420_v26 = vpop.f32.mrf.mxu0 }
 0x216   :  { %v1298_v27 = vpack.c.bf16 %v962_v21, %v961_v18  ;;  %v1278_v28 = vpack.c.bf16 %v954_v23, %v953_v16  ;;  %v923_v29 = vadd.f32 %v1419_v24, %v1841_v45  ;;  %v931_v30 = vadd.f32 %v1443_v22, %v1841_v45 }
 0x217   :  { %v1445_v31 = vpop.f32.mrf.mxu1  ;;  %v1421_v32 = vpop.f32.mrf.mxu0 }
 0x218   :  { %1354 = vst [vmem:[%s1927_s4 + $0x28] sm:$0xff] %v1298_v27   ;;  %v1446_v33 = vadd.f32 %v1445_v31, %v1444_v25  ;;  %1350 = vst [vmem:[%s1927_s4 + $0x8] sm:$0xff] %v1278_v28   ;;  %v1422_v34 = vadd.f32 %v1421_v32, %v1420_v26  ;;  %v955_v38 = vmax.f32 %v923_v29, 0.0  ;;  %v963_v40 = vmax.f32 %v931_v30, 0.0 }
 0x219   :  { %v1447_v35 = vpop.f32.mrf.mxu1  ;;  %v1423_v36 = vpop.f32.mrf.mxu0 }
 0x21a   :  { %v932_v37 = vadd.f32 %v1446_v33, %v1841_v45  ;;  %v924_v39 = vadd.f32 %v1422_v34, %v1841_v45 }
 0x21b   :  { %v1448_v41 = vpop.f32.mrf.mxu1  ;;  %v1424_v42 = vpop.f32.mrf.mxu0 }
 0x21c   :  { %v964_v43 = vmax.f32 %v932_v37, 0.0  ;;  %v1449_v44 = vadd.f32 %v1448_v41, %v1447_v35  ;;  %v956_v46 = vmax.f32 %v924_v39, 0.0  ;;  %v1425_v47 = vadd.f32 %v1424_v42, %v1423_v36 }
 0x21d   :  { %v1450_v48 = vpop.f32.mrf.mxu1  ;;  %v1426_v49 = vpop.f32.mrf.mxu0 }
 0x21e   :  { %v1303_v50 = vpack.c.bf16 %v964_v43, %v963_v40  ;;  %v1283_v51 = vpack.c.bf16 %v956_v46, %v955_v38  ;;  %v925_v52 = vadd.f32 %v1425_v47, %v1841_v45  ;;  %v933_v55 = vadd.f32 %v1449_v44, %v1841_v45 }
 0x21f   :  { %v1451_v53 = vpop.f32.mrf.mxu1  ;;  %v1427_v54 = vpop.f32.mrf.mxu0 }
 0x220   :  { %1355 = vst [vmem:[%s1927_s4 + $0x30] sm:$0xff] %v1303_v50   ;;  %v1452_v56 = vadd.f32 %v1451_v53, %v1450_v48  ;;  %1351 = vst [vmem:[%s1927_s4 + $0x10] sm:$0xff] %v1283_v51   ;;  %v1428_v57 = vadd.f32 %v1427_v54, %v1426_v49  ;;  %v957_v60 = vmax.f32 %v925_v52, 0.0  ;;  %v965_v63 = vmax.f32 %v933_v55, 0.0 }
 0x221   :  { %v1453_v58 = vpop.f32.mrf.mxu1 }
 0x222   :  { %v934_v59 = vadd.f32 %v1452_v56, %v1841_v45  ;;  %v926_v61 = vadd.f32 %v1428_v57, %v1841_v45 }
 0x223   :  { %v1454_v62 = vpop.f32.mrf.mxu1 }
 0x224   :  { %v966_v0 = vmax.f32 %v934_v59, 0.0  ;;  %v1455_v1 = vadd.f32 %v1454_v62, %v1453_v58  ;;  %v958_v2 = vmax.f32 %v926_v61, 0.0 }
 0x225   :  { %v1456_v3 = vpop.f32.mrf.mxu1 }
 0x226   :  { %v1308_v4 = vpack.c.bf16 %v966_v0, %v965_v63  ;;  %v1288_v5 = vpack.c.bf16 %v958_v2, %v957_v60  ;;  %v935_v7 = vadd.f32 %v1455_v1, %v1841_v45 }
 0x227   :  { %v1457_v6 = vpop.f32.mrf.mxu1 }
 0x228   :  { %1356 = vst [vmem:[%s1927_s4 + $0x38] sm:$0xff] %v1308_v4   ;;  %v1458_v8 = vadd.f32 %v1457_v6, %v1456_v3  ;;  %1352 = vst [vmem:[%s1927_s4 + $0x18] sm:$0xff] %v1288_v5   ;;  %v967_v12 = vmax.f32 %v935_v7, 0.0 }
 0x229   :  { %v1459_v9 = vpop.f32.mrf.mxu1 }
 0x22a   :  { %v936_v10 = vadd.f32 %v1458_v8, %v1841_v45 }
 0x22b   :  { %v1460_v11 = vpop.f32.mrf.mxu1 }
 0x22c   :  { %v968_v13 = vmax.f32 %v936_v10, 0.0  ;;  %v1461_v14 = vadd.f32 %v1460_v11, %v1459_v9 }
 0x22d   :  { %v1462_v15 = vpop.f32.mrf.mxu1 }
 0x22e   :  { %v1313_v16 = vpack.c.bf16 %v968_v13, %v967_v12  ;;  %v937_v18 = vadd.f32 %v1461_v14, %v1841_v45 }
 0x22f   :  { %v1463_v17 = vpop.f32.mrf.mxu1 }
 0x230   :  { %1357 = vst [vmem:[%s1927_s4 + $0x40] sm:$0xff] %v1313_v16   ;;  %v1464_v19 = vadd.f32 %v1463_v17, %v1462_v15  ;;  %v969_v23 = vmax.f32 %v937_v18, 0.0 }
 0x231   :  { %v1465_v20 = vpop.f32.mrf.mxu1 }
 0x232   :  { %v938_v21 = vadd.f32 %v1464_v19, %v1841_v45 }
 0x233   :  { %v1466_v22 = vpop.f32.mrf.mxu1 }
 0x234   :  { %v970_v24 = vmax.f32 %v938_v21, 0.0  ;;  %v1467_v25 = vadd.f32 %v1466_v22, %v1465_v20 }
 0x235   :  { %v1468_v26 = vpop.f32.mrf.mxu1 }
 0x236   :  { %v1318_v27 = vpack.c.bf16 %v970_v24, %v969_v23  ;;  %v939_v29 = vadd.f32 %v1467_v25, %v1841_v45 }
 0x237   :  { %v1469_v28 = vpop.f32.mrf.mxu1 }
 0x238   :  { %1358 = vst [vmem:[%s1927_s4 + $0x48] sm:$0xff] %v1318_v27   ;;  %v1470_v30 = vadd.f32 %v1469_v28, %v1468_v26  ;;  %v971_v34 = vmax.f32 %v939_v29, 0.0 }
 0x239   :  { %v1471_v31 = vpop.f32.mrf.mxu1 }
 0x23a   :  { %v940_v32 = vadd.f32 %v1470_v30, %v1841_v45 }
 0x23b   :  { %v1472_v33 = vpop.f32.mrf.mxu1 }
 0x23c   :  { %v972_v35 = vmax.f32 %v940_v32, 0.0  ;;  %v1473_v36 = vadd.f32 %v1472_v33, %v1471_v31 }
 0x23d   :  { %v1474_v37 = vpop.f32.mrf.mxu1 }
 0x23e   :  { %v1323_v38 = vpack.c.bf16 %v972_v35, %v971_v34  ;;  %v941_v40 = vadd.f32 %v1473_v36, %v1841_v45 }
 0x23f   :  { %v1475_v39 = vpop.f32.mrf.mxu1 }
 0x240   :  { %1359 = vst [vmem:[%s1927_s4 + $0x50] sm:$0xff] %v1323_v38   ;;  %v1476_v41 = vadd.f32 %v1475_v39, %v1474_v37  ;;  %v973_v46 = vmax.f32 %v941_v40, 0.0 }
 0x241   :  { %v1477_v42 = vpop.f32.mrf.mxu1 }
 0x242   :  { %v942_v43 = vadd.f32 %v1476_v41, %v1841_v45 }
 0x243   :  { %v1478_v44 = vpop.f32.mrf.mxu1 }
 0x244   :  { %v974_v47 = vmax.f32 %v942_v43, 0.0  ;;  %v1479_v48 = vadd.f32 %v1478_v44, %v1477_v42 }
 0x245   :  { %v1480_v49 = vpop.f32.mrf.mxu1 }
 0x246   :  { %v1328_v50 = vpack.c.bf16 %v974_v47, %v973_v46  ;;  %v943_v52 = vadd.f32 %v1479_v48, %v1841_v45 }
 0x247   :  { %v1481_v51 = vpop.f32.mrf.mxu1 }
 0x248   :  { %1360 = vst [vmem:[%s1927_s4 + $0x58] sm:$0xff] %v1328_v50   ;;  %v1482_v53 = vadd.f32 %v1481_v51, %v1480_v49  ;;  %v975_v57 = vmax.f32 %v943_v52, 0.0 }
 0x249   :  { %v1483_v54 = vpop.f32.mrf.mxu1 }
 0x24a   :  { %v944_v55 = vadd.f32 %v1482_v53, %v1841_v45 }
 0x24b   :  { %v1484_v56 = vpop.f32.mrf.mxu1 }
 0x24c   :  { %v976_v58 = vmax.f32 %v944_v55, 0.0  ;;  %v1485_v59 = vadd.f32 %v1484_v56, %v1483_v54 }
 0x24d   :  { %v1486_v60 = vpop.f32.mrf.mxu1 }
 0x24e   :  { %v1333_v61 = vpack.c.bf16 %v976_v58, %v975_v57  ;;  %v945_v63 = vadd.f32 %v1485_v59, %v1841_v45 }
 0x24f   :  { %v1487_v62 = vpop.f32.mrf.mxu1 }
 0x250   :  { %1361 = vst [vmem:[%s1927_s4 + $0x60] sm:$0xff] %v1333_v61   ;;  %v1488_v0 = vadd.f32 %v1487_v62, %v1486_v60  ;;  %v977_v4 = vmax.f32 %v945_v63, 0.0 }
 0x251   :  { %v1489_v1 = vpop.f32.mrf.mxu1 }
 0x252   :  { %v946_v2 = vadd.f32 %v1488_v0, %v1841_v45 }
 0x253   :  { %v1490_v3 = vpop.f32.mrf.mxu1 }
 0x254   :  { %v978_v5 = vmax.f32 %v946_v2, 0.0  ;;  %v1491_v6 = vadd.f32 %v1490_v3, %v1489_v1 }
 0x255   :  { %v1492_v7 = vpop.f32.mrf.mxu1 }
 0x256   :  { %v1338_v8 = vpack.c.bf16 %v978_v5, %v977_v4  ;;  %v947_v10 = vadd.f32 %v1491_v6, %v1841_v45 }
 0x257   :  { %v1493_v9 = vpop.f32.mrf.mxu1 }
 0x258   :  { %1362 = vst [vmem:[%s1927_s4 + $0x68] sm:$0xff] %v1338_v8   ;;  %v1494_v11 = vadd.f32 %v1493_v9, %v1492_v7  ;;  %v979_v15 = vmax.f32 %v947_v10, 0.0 }
 0x259   :  { %v1495_v12 = vpop.f32.mrf.mxu1 }
 0x25a   :  { %v948_v13 = vadd.f32 %v1494_v11, %v1841_v45 }
 0x25b   :  { %v1496_v14 = vpop.f32.mrf.mxu1 }
 0x25c   :  { %v980_v16 = vmax.f32 %v948_v13, 0.0  ;;  %v1497_v17 = vadd.f32 %v1496_v14, %v1495_v12 }
 0x25d   :  { %v1498_v18 = vpop.f32.mrf.mxu1 }
 0x25e   :  { %v1343_v19 = vpack.c.bf16 %v980_v16, %v979_v15  ;;  %v949_v21 = vadd.f32 %v1497_v17, %v1841_v45 }
 0x25f   :  { %v1499_v20 = vpop.f32.mrf.mxu1 }
 0x260   :  { %1363 = vst [vmem:[%s1927_s4 + $0x70] sm:$0xff] %v1343_v19   ;;  %v1500_v22 = vadd.f32 %v1499_v20, %v1498_v18  ;;  %v981_v24 = vmax.f32 %v949_v21, 0.0 }
 0x262   :  { %v950_v23 = vadd.f32 %v1500_v22, %v1841_v45 }
 0x264   :  { %v982_v25 = vmax.f32 %v950_v23, 0.0 }
 0x266   :  { %v1348_v26 = vpack.c.bf16 %v982_v25, %v981_v24 }
 0x268   :  { %1364 = vst [vmem:[%s1927_s4 + $0x78] sm:$0xff] %v1348_v26  }

</bundles_post_ra>
